<compile_context>
chip_gen: v6e
topology: v6e:2x2x1
jax: 0.10.0
libtpu: 0.0.40
codegen_flags: <defaults>
</compile_context>

<pallas_src>
import jax
import jax.numpy as jnp
from jax import lax
from jax.experimental import pallas as pl
from jax.experimental.pallas import tpu as pltpu


def _sentiment_kernel(ids_ref, embed_ref, w_ref, b_ref, o_ref, act_ref):
    # ids_ref   : (B, L)        int32, SMEM (scalar prefetch: full ids array)
    # embed_ref : (V, E)        f32,   VMEM (whole embedding table)
    # w_ref     : (C_pad, L*E)  f32,   VMEM (native nn.Linear layout, lane-dense K)
    # b_ref     : (1, C_pad)    f32,   VMEM (-1e30 on padded classes)
    # o_ref     : (TB, C_pad)   f32,   VMEM (lane-dense, unmasked store)
    # act_ref   : (TB, L*E)     f32,   VMEM scratch (gathered + flattened embeddings)
    TB, K = act_ref.shape
    V, E = embed_ref.shape
    L = ids_ref.shape[1]
    base = pl.program_id(0) * TB

    # Gather + flatten: act[b, l*E:(l+1)*E] = embed[ids[base+b, l], :]
    def gather_doc(b, carry):
        for l in range(L):  # static unroll -> static lane offsets
            tok = jnp.clip(ids_ref[base + b, l], 0, V - 1)  # VMEM has no bounds check
            act_ref[pl.ds(b, 1), l * E:(l + 1) * E] = embed_ref[pl.ds(tok, 1), :]
        return carry

    lax.fori_loop(0, TB, gather_doc, 0, unroll=True)

    # Single MXU contraction: (TB, K) x (C_pad, K)^T -> (TB, C_pad).
    logits = lax.dot_general(
        act_ref[...], w_ref[...], (((1,), (1,)), ((), ())),
        preferred_element_type=jnp.float32)
    logits = logits + b_ref[...]

    # Numerically-stable softmax over the (padded) class axis.  Padded classes
    # carry bias -1e30, so exp() underflows to exactly 0 and does not perturb
    # the real-class probabilities.  One reciprocal + multiply (not a divide).
    m = jnp.max(logits, axis=-1, keepdims=True)
    e = jnp.exp(logits - m)
    denom = jnp.sum(e, axis=-1, keepdims=True)
    o_ref[...] = e * pl.reciprocal(denom, approx=False)


def prepare_params(embed_w, lin_w, lin_b):
    """One-time, model-load-time parameter preparation (no per-call relayout)."""
    C, K = lin_w.shape
    C_pad = 128 * pl.cdiv(C, 128)  # lane-dense class axis
    w_pad = jnp.zeros((C_pad, K), jnp.float32).at[:C, :].set(lin_w.astype(jnp.float32))
    b_pad = jnp.full((1, C_pad), -1e30, jnp.float32).at[0, :C].set(lin_b.astype(jnp.float32))
    return embed_w.astype(jnp.float32), w_pad, b_pad


def analisis_sentimen_forward(ids, embed_w, w_pad, b_pad, *, num_class, doc_tile=8):
    """Batched AnalisisSentimen.forward: row b of the result equals the torch
    module's forward(data=ids[b]) squeezed to (C,)."""
    B, L = ids.shape
    V, E = embed_w.shape
    C_pad, K = w_pad.shape
    assert K == L * E, "linear in_features must equal embed_size * document_length"
    assert B % doc_tile == 0, "batch must be a multiple of doc_tile"

    out = pl.pallas_call(
        _sentiment_kernel,
        out_shape=jax.ShapeDtypeStruct((B, C_pad), jnp.float32),
        grid_spec=pltpu.PrefetchScalarGridSpec(
            num_scalar_prefetch=1,                                   # token ids -> SMEM
            grid=(B // doc_tile,),
            in_specs=[
                pl.BlockSpec((V, E), lambda i, ids_s: (0, 0)),        # embedding table
                pl.BlockSpec((C_pad, K), lambda i, ids_s: (0, 0)),    # padded linear weight
                pl.BlockSpec((1, C_pad), lambda i, ids_s: (0, 0)),    # padded bias
            ],
            out_specs=pl.BlockSpec((doc_tile, C_pad), lambda i, ids_s: (i, 0)),
            scratch_shapes=[pltpu.VMEM((doc_tile, K), jnp.float32)],  # flattened activations
        ),
        compiler_params=pltpu.CompilerParams(
            dimension_semantics=("parallel",)),                       # shard doc tiles across TCs
    )(ids.astype(jnp.int32), embed_w, w_pad, b_pad)

    return out[:, :num_class]


def _reference_forward_single(data, embed_w, lin_w, lin_b):
    emb = embed_w[data].reshape(-1)
    logits = lin_w @ emb + lin_b
    return jax.nn.softmax(logits, axis=0)


if __name__ == "__main__":
    # Small shapes consistent with the module's __init__ signature.
    vocab_size = 50
    embed_size = 32
    document_length = 8
    num_class = 4
    batch = 16          # documents; multiple of doc_tile
    doc_tile = 8

    key = jax.random.PRNGKey(0)
    k_emb, k_lin, k_data = jax.random.split(key, 3)

    initrange = 0.5
    embed_w = jax.random.uniform(
        k_emb, (vocab_size, embed_size), jnp.float32, -initrange, initrange)
    lin_w = jax.random.uniform(
        k_lin, (num_class, embed_size * document_length), jnp.float32,
        -initrange, initrange)
    lin_b = jnp.zeros((num_class,), jnp.float32)

    data = jax.random.randint(
        k_data, (batch, document_length), 0, vocab_size, jnp.int32)

    # One-time (load-time) parameter prep: casts + class-axis padding.
    embed_p, w_pad, b_pad = prepare_params(embed_w, lin_w, lin_b)

    out = analisis_sentimen_forward(
        data, embed_p, w_pad, b_pad, num_class=num_class, doc_tile=doc_tile)
    out = jax.block_until_ready(out)

    ref = jnp.stack([
        _reference_forward_single(data[b], embed_w, lin_w, lin_b)
        for b in range(batch)
    ])

    assert out.shape == (batch, num_class)
    assert jnp.allclose(out, ref, atol=1e-5, rtol=1e-5)

    print("KERNEL_OK")
</pallas_src>

<mosaic_0001>
module attributes {stable_mosaic.version = 11 : i64} {
  func.func @_sentiment_kernel(%arg0: i32, %arg1: memref<16x8xi32, #tpu.memory_space<smem>>, %arg2: memref<50x32xf32, #tpu.memory_space<vmem>>, %arg3: memref<128x256xf32, #tpu.memory_space<vmem>>, %arg4: memref<1x128xf32, #tpu.memory_space<vmem>>, %arg5: memref<8x128xf32, #tpu.memory_space<vmem>>, %arg6: memref<8x256xf32, #tpu.memory_space<vmem>>) attributes {dimension_semantics = [#tpu.dimension_semantics<parallel>], iteration_bounds = array<i64: 2>, scalar_prefetch = 1 : i64, scratch_operands = 1 : i64, tpu.core_type = #tpu.core_type<tc>, window_params = [{pipeline_mode = #tpu.pipeline_mode<synchronous>, transform_indices = @transform_0, window_bounds = array<i64: 50, 32>}, {pipeline_mode = #tpu.pipeline_mode<synchronous>, transform_indices = @transform_1, window_bounds = array<i64: 128, 256>}, {pipeline_mode = #tpu.pipeline_mode<synchronous>, transform_indices = @transform_2, window_bounds = array<i64: 1, 128>}, {transform_indices = @transform_3, window_bounds = array<i64: 8, 128>}]} {
    %c8_i32 = arith.constant 8 : i32
    %0 = arith.muli %arg0, %c8_i32 : i32
    %c0_i32 = arith.constant 0 : i32
    %1 = arith.addi %0, %c0_i32 : i32
    %2 = arith.index_cast %1 : i32 to index
    %c0 = arith.constant 0 : index
    %3 = memref.load %arg1[%2, %c0] : memref<16x8xi32, #tpu.memory_space<smem>>
    %c0_i32_0 = arith.constant 0 : i32
    %c49_i32 = arith.constant 49 : i32
    %4 = arith.maxsi %c0_i32_0, %3 : i32
    %5 = arith.minsi %c49_i32, %4 : i32
    %6 = arith.index_cast %5 : i32 to index
    %c0_1 = arith.constant 0 : index
    %7 = vector.load %arg2[%6, %c0_1] : memref<50x32xf32, #tpu.memory_space<vmem>>, vector<1x32xf32>
    %8 = arith.index_cast %c0_i32 : i32 to index
    %c0_2 = arith.constant 0 : index
    %9 = vector.load %arg6[%8, %c0_2] : memref<8x256xf32, #tpu.memory_space<vmem>>, vector<1x32xf32>
    tpu.vector_store %arg6[%8, %c0_2], %7 {strides = array<i32>} : memref<8x256xf32, #tpu.memory_space<vmem>>, vector<1x32xf32>,
    %10 = arith.addi %0, %c0_i32 : i32
    %11 = arith.index_cast %10 : i32 to index
    %c1 = arith.constant 1 : index
    %12 = memref.load %arg1[%11, %c1] : memref<16x8xi32, #tpu.memory_space<smem>>
    %c0_i32_3 = arith.constant 0 : i32
    %c49_i32_4 = arith.constant 49 : i32
    %13 = arith.maxsi %c0_i32_3, %12 : i32
    %14 = arith.minsi %c49_i32_4, %13 : i32
    %15 = arith.index_cast %14 : i32 to index
    %c0_5 = arith.constant 0 : index
    %16 = vector.load %arg2[%15, %c0_5] : memref<50x32xf32, #tpu.memory_space<vmem>>, vector<1x32xf32>
    %17 = arith.index_cast %c0_i32 : i32 to index
    %c32 = arith.constant 32 : index
    %18 = vector.load %arg6[%17, %c32] : memref<8x256xf32, #tpu.memory_space<vmem>>, vector<1x32xf32>
    tpu.vector_store %arg6[%17, %c32], %16 {strides = array<i32>} : memref<8x256xf32, #tpu.memory_space<vmem>>, vector<1x32xf32>,
    %19 = arith.addi %0, %c0_i32 : i32
    %20 = arith.index_cast %19 : i32 to index
    %c2 = arith.constant 2 : index
    %21 = memref.load %arg1[%20, %c2] : memref<16x8xi32, #tpu.memory_space<smem>>
    %c0_i32_6 = arith.constant 0 : i32
    %c49_i32_7 = arith.constant 49 : i32
    %22 = arith.maxsi %c0_i32_6, %21 : i32
    %23 = arith.minsi %c49_i32_7, %22 : i32
    %24 = arith.index_cast %23 : i32 to index
    %c0_8 = arith.constant 0 : index
    %25 = vector.load %arg2[%24, %c0_8] : memref<50x32xf32, #tpu.memory_space<vmem>>, vector<1x32xf32>
    %26 = arith.index_cast %c0_i32 : i32 to index
    %c64 = arith.constant 64 : index
    %27 = vector.load %arg6[%26, %c64] : memref<8x256xf32, #tpu.memory_space<vmem>>, vector<1x32xf32>
    tpu.vector_store %arg6[%26, %c64], %25 {strides = array<i32>} : memref<8x256xf32, #tpu.memory_space<vmem>>, vector<1x32xf32>,
    %28 = arith.addi %0, %c0_i32 : i32
    %29 = arith.index_cast %28 : i32 to index
    %c3 = arith.constant 3 : index
    %30 = memref.load %arg1[%29, %c3] : memref<16x8xi32, #tpu.memory_space<smem>>
    %c0_i32_9 = arith.constant 0 : i32
    %c49_i32_10 = arith.constant 49 : i32
    %31 = arith.maxsi %c0_i32_9, %30 : i32
    %32 = arith.minsi %c49_i32_10, %31 : i32
    %33 = arith.index_cast %32 : i32 to index
    %c0_11 = arith.constant 0 : index
    %34 = vector.load %arg2[%33, %c0_11] : memref<50x32xf32, #tpu.memory_space<vmem>>, vector<1x32xf32>
    %35 = arith.index_cast %c0_i32 : i32 to index
    %c96 = arith.constant 96 : index
    %36 = vector.load %arg6[%35, %c96] : memref<8x256xf32, #tpu.memory_space<vmem>>, vector<1x32xf32>
    tpu.vector_store %arg6[%35, %c96], %34 {strides = array<i32>} : memref<8x256xf32, #tpu.memory_space<vmem>>, vector<1x32xf32>,
    %37 = arith.addi %0, %c0_i32 : i32
    %38 = arith.index_cast %37 : i32 to index
    %c4 = arith.constant 4 : index
    %39 = memref.load %arg1[%38, %c4] : memref<16x8xi32, #tpu.memory_space<smem>>
    %c0_i32_12 = arith.constant 0 : i32
    %c49_i32_13 = arith.constant 49 : i32
    %40 = arith.maxsi %c0_i32_12, %39 : i32
    %41 = arith.minsi %c49_i32_13, %40 : i32
    %42 = arith.index_cast %41 : i32 to index
    %c0_14 = arith.constant 0 : index
    %43 = vector.load %arg2[%42, %c0_14] : memref<50x32xf32, #tpu.memory_space<vmem>>, vector<1x32xf32>
    %44 = arith.index_cast %c0_i32 : i32 to index
    %c128 = arith.constant 128 : index
    %45 = vector.load %arg6[%44, %c128] : memref<8x256xf32, #tpu.memory_space<vmem>>, vector<1x32xf32>
    tpu.vector_store %arg6[%44, %c128], %43 {strides = array<i32>} : memref<8x256xf32, #tpu.memory_space<vmem>>, vector<1x32xf32>,
    %46 = arith.addi %0, %c0_i32 : i32
    %47 = arith.index_cast %46 : i32 to index
    %c5 = arith.constant 5 : index
    %48 = memref.load %arg1[%47, %c5] : memref<16x8xi32, #tpu.memory_space<smem>>
    %c0_i32_15 = arith.constant 0 : i32
    %c49_i32_16 = arith.constant 49 : i32
    %49 = arith.maxsi %c0_i32_15, %48 : i32
    %50 = arith.minsi %c49_i32_16, %49 : i32
    %51 = arith.index_cast %50 : i32 to index
    %c0_17 = arith.constant 0 : index
    %52 = vector.load %arg2[%51, %c0_17] : memref<50x32xf32, #tpu.memory_space<vmem>>, vector<1x32xf32>
    %53 = arith.index_cast %c0_i32 : i32 to index
    %c160 = arith.constant 160 : index
    %54 = vector.load %arg6[%53, %c160] : memref<8x256xf32, #tpu.memory_space<vmem>>, vector<1x32xf32>
    tpu.vector_store %arg6[%53, %c160], %52 {strides = array<i32>} : memref<8x256xf32, #tpu.memory_space<vmem>>, vector<1x32xf32>,
    %55 = arith.addi %0, %c0_i32 : i32
    %56 = arith.index_cast %55 : i32 to index
    %c6 = arith.constant 6 : index
    %57 = memref.load %arg1[%56, %c6] : memref<16x8xi32, #tpu.memory_space<smem>>
    %c0_i32_18 = arith.constant 0 : i32
    %c49_i32_19 = arith.constant 49 : i32
    %58 = arith.maxsi %c0_i32_18, %57 : i32
    %59 = arith.minsi %c49_i32_19, %58 : i32
    %60 = arith.index_cast %59 : i32 to index
    %c0_20 = arith.constant 0 : index
    %61 = vector.load %arg2[%60, %c0_20] : memref<50x32xf32, #tpu.memory_space<vmem>>, vector<1x32xf32>
    %62 = arith.index_cast %c0_i32 : i32 to index
    %c192 = arith.constant 192 : index
    %63 = vector.load %arg6[%62, %c192] : memref<8x256xf32, #tpu.memory_space<vmem>>, vector<1x32xf32>
    tpu.vector_store %arg6[%62, %c192], %61 {strides = array<i32>} : memref<8x256xf32, #tpu.memory_space<vmem>>, vector<1x32xf32>,
    %64 = arith.addi %0, %c0_i32 : i32
    %65 = arith.index_cast %64 : i32 to index
    %c7 = arith.constant 7 : index
    %66 = memref.load %arg1[%65, %c7] : memref<16x8xi32, #tpu.memory_space<smem>>
    %c0_i32_21 = arith.constant 0 : i32
    %c49_i32_22 = arith.constant 49 : i32
    %67 = arith.maxsi %c0_i32_21, %66 : i32
    %68 = arith.minsi %c49_i32_22, %67 : i32
    %69 = arith.index_cast %68 : i32 to index
    %c0_23 = arith.constant 0 : index
    %70 = vector.load %arg2[%69, %c0_23] : memref<50x32xf32, #tpu.memory_space<vmem>>, vector<1x32xf32>
    %71 = arith.index_cast %c0_i32 : i32 to index
    %c224 = arith.constant 224 : index
    %72 = vector.load %arg6[%71, %c224] : memref<8x256xf32, #tpu.memory_space<vmem>>, vector<1x32xf32>
    tpu.vector_store %arg6[%71, %c224], %70 {strides = array<i32>} : memref<8x256xf32, #tpu.memory_space<vmem>>, vector<1x32xf32>,
    %c1_i32 = arith.constant 1 : i32
    %73 = arith.addi %0, %c1_i32 : i32
    %74 = arith.index_cast %73 : i32 to index
    %c0_24 = arith.constant 0 : index
    %75 = memref.load %arg1[%74, %c0_24] : memref<16x8xi32, #tpu.memory_space<smem>>
    %c0_i32_25 = arith.constant 0 : i32
    %c49_i32_26 = arith.constant 49 : i32
    %76 = arith.maxsi %c0_i32_25, %75 : i32
    %77 = arith.minsi %c49_i32_26, %76 : i32
    %78 = arith.index_cast %77 : i32 to index
    %c0_27 = arith.constant 0 : index
    %79 = vector.load %arg2[%78, %c0_27] : memref<50x32xf32, #tpu.memory_space<vmem>>, vector<1x32xf32>
    %80 = arith.index_cast %c1_i32 : i32 to index
    %c0_28 = arith.constant 0 : index
    %81 = vector.load %arg6[%80, %c0_28] : memref<8x256xf32, #tpu.memory_space<vmem>>, vector<1x32xf32>
    tpu.vector_store %arg6[%80, %c0_28], %79 {strides = array<i32>} : memref<8x256xf32, #tpu.memory_space<vmem>>, vector<1x32xf32>,
    %82 = arith.addi %0, %c1_i32 : i32
    %83 = arith.index_cast %82 : i32 to index
    %c1_29 = arith.constant 1 : index
    %84 = memref.load %arg1[%83, %c1_29] : memref<16x8xi32, #tpu.memory_space<smem>>
    %c0_i32_30 = arith.constant 0 : i32
    %c49_i32_31 = arith.constant 49 : i32
    %85 = arith.maxsi %c0_i32_30, %84 : i32
    %86 = arith.minsi %c49_i32_31, %85 : i32
    %87 = arith.index_cast %86 : i32 to index
    %c0_32 = arith.constant 0 : index
    %88 = vector.load %arg2[%87, %c0_32] : memref<50x32xf32, #tpu.memory_space<vmem>>, vector<1x32xf32>
    %89 = arith.index_cast %c1_i32 : i32 to index
    %c32_33 = arith.constant 32 : index
    %90 = vector.load %arg6[%89, %c32_33] : memref<8x256xf32, #tpu.memory_space<vmem>>, vector<1x32xf32>
    tpu.vector_store %arg6[%89, %c32_33], %88 {strides = array<i32>} : memref<8x256xf32, #tpu.memory_space<vmem>>, vector<1x32xf32>,
    %91 = arith.addi %0, %c1_i32 : i32
    %92 = arith.index_cast %91 : i32 to index
    %c2_34 = arith.constant 2 : index
    %93 = memref.load %arg1[%92, %c2_34] : memref<16x8xi32, #tpu.memory_space<smem>>
    %c0_i32_35 = arith.constant 0 : i32
    %c49_i32_36 = arith.constant 49 : i32
    %94 = arith.maxsi %c0_i32_35, %93 : i32
    %95 = arith.minsi %c49_i32_36, %94 : i32
    %96 = arith.index_cast %95 : i32 to index
    %c0_37 = arith.constant 0 : index
    %97 = vector.load %arg2[%96, %c0_37] : memref<50x32xf32, #tpu.memory_space<vmem>>, vector<1x32xf32>
    %98 = arith.index_cast %c1_i32 : i32 to index
    %c64_38 = arith.constant 64 : index
    %99 = vector.load %arg6[%98, %c64_38] : memref<8x256xf32, #tpu.memory_space<vmem>>, vector<1x32xf32>
    tpu.vector_store %arg6[%98, %c64_38], %97 {strides = array<i32>} : memref<8x256xf32, #tpu.memory_space<vmem>>, vector<1x32xf32>,
    %100 = arith.addi %0, %c1_i32 : i32
    %101 = arith.index_cast %100 : i32 to index
    %c3_39 = arith.constant 3 : index
    %102 = memref.load %arg1[%101, %c3_39] : memref<16x8xi32, #tpu.memory_space<smem>>
    %c0_i32_40 = arith.constant 0 : i32
    %c49_i32_41 = arith.constant 49 : i32
    %103 = arith.maxsi %c0_i32_40, %102 : i32
    %104 = arith.minsi %c49_i32_41, %103 : i32
    %105 = arith.index_cast %104 : i32 to index
    %c0_42 = arith.constant 0 : index
    %106 = vector.load %arg2[%105, %c0_42] : memref<50x32xf32, #tpu.memory_space<vmem>>, vector<1x32xf32>
    %107 = arith.index_cast %c1_i32 : i32 to index
    %c96_43 = arith.constant 96 : index
    %108 = vector.load %arg6[%107, %c96_43] : memref<8x256xf32, #tpu.memory_space<vmem>>, vector<1x32xf32>
    tpu.vector_store %arg6[%107, %c96_43], %106 {strides = array<i32>} : memref<8x256xf32, #tpu.memory_space<vmem>>, vector<1x32xf32>,
    %109 = arith.addi %0, %c1_i32 : i32
    %110 = arith.index_cast %109 : i32 to index
    %c4_44 = arith.constant 4 : index
    %111 = memref.load %arg1[%110, %c4_44] : memref<16x8xi32, #tpu.memory_space<smem>>
    %c0_i32_45 = arith.constant 0 : i32
    %c49_i32_46 = arith.constant 49 : i32
    %112 = arith.maxsi %c0_i32_45, %111 : i32
    %113 = arith.minsi %c49_i32_46, %112 : i32
    %114 = arith.index_cast %113 : i32 to index
    %c0_47 = arith.constant 0 : index
    %115 = vector.load %arg2[%114, %c0_47] : memref<50x32xf32, #tpu.memory_space<vmem>>, vector<1x32xf32>
    %116 = arith.index_cast %c1_i32 : i32 to index
    %c128_48 = arith.constant 128 : index
    %117 = vector.load %arg6[%116, %c128_48] : memref<8x256xf32, #tpu.memory_space<vmem>>, vector<1x32xf32>
    tpu.vector_store %arg6[%116, %c128_48], %115 {strides = array<i32>} : memref<8x256xf32, #tpu.memory_space<vmem>>, vector<1x32xf32>,
    %118 = arith.addi %0, %c1_i32 : i32
    %119 = arith.index_cast %118 : i32 to index
    %c5_49 = arith.constant 5 : index
    %120 = memref.load %arg1[%119, %c5_49] : memref<16x8xi32, #tpu.memory_space<smem>>
    %c0_i32_50 = arith.constant 0 : i32
    %c49_i32_51 = arith.constant 49 : i32
    %121 = arith.maxsi %c0_i32_50, %120 : i32
    %122 = arith.minsi %c49_i32_51, %121 : i32
    %123 = arith.index_cast %122 : i32 to index
    %c0_52 = arith.constant 0 : index
    %124 = vector.load %arg2[%123, %c0_52] : memref<50x32xf32, #tpu.memory_space<vmem>>, vector<1x32xf32>
    %125 = arith.index_cast %c1_i32 : i32 to index
    %c160_53 = arith.constant 160 : index
    %126 = vector.load %arg6[%125, %c160_53] : memref<8x256xf32, #tpu.memory_space<vmem>>, vector<1x32xf32>
    tpu.vector_store %arg6[%125, %c160_53], %124 {strides = array<i32>} : memref<8x256xf32, #tpu.memory_space<vmem>>, vector<1x32xf32>,
    %127 = arith.addi %0, %c1_i32 : i32
    %128 = arith.index_cast %127 : i32 to index
    %c6_54 = arith.constant 6 : index
    %129 = memref.load %arg1[%128, %c6_54] : memref<16x8xi32, #tpu.memory_space<smem>>
    %c0_i32_55 = arith.constant 0 : i32
    %c49_i32_56 = arith.constant 49 : i32
    %130 = arith.maxsi %c0_i32_55, %129 : i32
    %131 = arith.minsi %c49_i32_56, %130 : i32
    %132 = arith.index_cast %131 : i32 to index
    %c0_57 = arith.constant 0 : index
    %133 = vector.load %arg2[%132, %c0_57] : memref<50x32xf32, #tpu.memory_space<vmem>>, vector<1x32xf32>
    %134 = arith.index_cast %c1_i32 : i32 to index
    %c192_58 = arith.constant 192 : index
    %135 = vector.load %arg6[%134, %c192_58] : memref<8x256xf32, #tpu.memory_space<vmem>>, vector<1x32xf32>
    tpu.vector_store %arg6[%134, %c192_58], %133 {strides = array<i32>} : memref<8x256xf32, #tpu.memory_space<vmem>>, vector<1x32xf32>,
    %136 = arith.addi %0, %c1_i32 : i32
    %137 = arith.index_cast %136 : i32 to index
    %c7_59 = arith.constant 7 : index
    %138 = memref.load %arg1[%137, %c7_59] : memref<16x8xi32, #tpu.memory_space<smem>>
    %c0_i32_60 = arith.constant 0 : i32
    %c49_i32_61 = arith.constant 49 : i32
    %139 = arith.maxsi %c0_i32_60, %138 : i32
    %140 = arith.minsi %c49_i32_61, %139 : i32
    %141 = arith.index_cast %140 : i32 to index
    %c0_62 = arith.constant 0 : index
    %142 = vector.load %arg2[%141, %c0_62] : memref<50x32xf32, #tpu.memory_space<vmem>>, vector<1x32xf32>
    %143 = arith.index_cast %c1_i32 : i32 to index
    %c224_63 = arith.constant 224 : index
    %144 = vector.load %arg6[%143, %c224_63] : memref<8x256xf32, #tpu.memory_space<vmem>>, vector<1x32xf32>
    tpu.vector_store %arg6[%143, %c224_63], %142 {strides = array<i32>} : memref<8x256xf32, #tpu.memory_space<vmem>>, vector<1x32xf32>,
    %c2_i32 = arith.constant 2 : i32
    %145 = arith.addi %0, %c2_i32 : i32
    %146 = arith.index_cast %145 : i32 to index
    %c0_64 = arith.constant 0 : index
    %147 = memref.load %arg1[%146, %c0_64] : memref<16x8xi32, #tpu.memory_space<smem>>
    %c0_i32_65 = arith.constant 0 : i32
    %c49_i32_66 = arith.constant 49 : i32
    %148 = arith.maxsi %c0_i32_65, %147 : i32
    %149 = arith.minsi %c49_i32_66, %148 : i32
    %150 = arith.index_cast %149 : i32 to index
    %c0_67 = arith.constant 0 : index
    %151 = vector.load %arg2[%150, %c0_67] : memref<50x32xf32, #tpu.memory_space<vmem>>, vector<1x32xf32>
    %152 = arith.index_cast %c2_i32 : i32 to index
    %c0_68 = arith.constant 0 : index
    %153 = vector.load %arg6[%152, %c0_68] : memref<8x256xf32, #tpu.memory_space<vmem>>, vector<1x32xf32>
    tpu.vector_store %arg6[%152, %c0_68], %151 {strides = array<i32>} : memref<8x256xf32, #tpu.memory_space<vmem>>, vector<1x32xf32>,
    %154 = arith.addi %0, %c2_i32 : i32
    %155 = arith.index_cast %154 : i32 to index
    %c1_69 = arith.constant 1 : index
    %156 = memref.load %arg1[%155, %c1_69] : memref<16x8xi32, #tpu.memory_space<smem>>
    %c0_i32_70 = arith.constant 0 : i32
    %c49_i32_71 = arith.constant 49 : i32
    %157 = arith.maxsi %c0_i32_70, %156 : i32
    %158 = arith.minsi %c49_i32_71, %157 : i32
    %159 = arith.index_cast %158 : i32 to index
    %c0_72 = arith.constant 0 : index
    %160 = vector.load %arg2[%159, %c0_72] : memref<50x32xf32, #tpu.memory_space<vmem>>, vector<1x32xf32>
    %161 = arith.index_cast %c2_i32 : i32 to index
    %c32_73 = arith.constant 32 : index
    %162 = vector.load %arg6[%161, %c32_73] : memref<8x256xf32, #tpu.memory_space<vmem>>, vector<1x32xf32>
    tpu.vector_store %arg6[%161, %c32_73], %160 {strides = array<i32>} : memref<8x256xf32, #tpu.memory_space<vmem>>, vector<1x32xf32>,
    %163 = arith.addi %0, %c2_i32 : i32
    %164 = arith.index_cast %163 : i32 to index
    %c2_74 = arith.constant 2 : index
    %165 = memref.load %arg1[%164, %c2_74] : memref<16x8xi32, #tpu.memory_space<smem>>
    %c0_i32_75 = arith.constant 0 : i32
    %c49_i32_76 = arith.constant 49 : i32
    %166 = arith.maxsi %c0_i32_75, %165 : i32
    %167 = arith.minsi %c49_i32_76, %166 : i32
    %168 = arith.index_cast %167 : i32 to index
    %c0_77 = arith.constant 0 : index
    %169 = vector.load %arg2[%168, %c0_77] : memref<50x32xf32, #tpu.memory_space<vmem>>, vector<1x32xf32>
    %170 = arith.index_cast %c2_i32 : i32 to index
    %c64_78 = arith.constant 64 : index
    %171 = vector.load %arg6[%170, %c64_78] : memref<8x256xf32, #tpu.memory_space<vmem>>, vector<1x32xf32>
    tpu.vector_store %arg6[%170, %c64_78], %169 {strides = array<i32>} : memref<8x256xf32, #tpu.memory_space<vmem>>, vector<1x32xf32>,
    %172 = arith.addi %0, %c2_i32 : i32
    %173 = arith.index_cast %172 : i32 to index
    %c3_79 = arith.constant 3 : index
    %174 = memref.load %arg1[%173, %c3_79] : memref<16x8xi32, #tpu.memory_space<smem>>
    %c0_i32_80 = arith.constant 0 : i32
    %c49_i32_81 = arith.constant 49 : i32
    %175 = arith.maxsi %c0_i32_80, %174 : i32
    %176 = arith.minsi %c49_i32_81, %175 : i32
    %177 = arith.index_cast %176 : i32 to index
    %c0_82 = arith.constant 0 : index
    %178 = vector.load %arg2[%177, %c0_82] : memref<50x32xf32, #tpu.memory_space<vmem>>, vector<1x32xf32>
    %179 = arith.index_cast %c2_i32 : i32 to index
    %c96_83 = arith.constant 96 : index
    %180 = vector.load %arg6[%179, %c96_83] : memref<8x256xf32, #tpu.memory_space<vmem>>, vector<1x32xf32>
    tpu.vector_store %arg6[%179, %c96_83], %178 {strides = array<i32>} : memref<8x256xf32, #tpu.memory_space<vmem>>, vector<1x32xf32>,
    %181 = arith.addi %0, %c2_i32 : i32
    %182 = arith.index_cast %181 : i32 to index
    %c4_84 = arith.constant 4 : index
    %183 = memref.load %arg1[%182, %c4_84] : memref<16x8xi32, #tpu.memory_space<smem>>
    %c0_i32_85 = arith.constant 0 : i32
    %c49_i32_86 = arith.constant 49 : i32
    %184 = arith.maxsi %c0_i32_85, %183 : i32
    %185 = arith.minsi %c49_i32_86, %184 : i32
    %186 = arith.index_cast %185 : i32 to index
    %c0_87 = arith.constant 0 : index
    %187 = vector.load %arg2[%186, %c0_87] : memref<50x32xf32, #tpu.memory_space<vmem>>, vector<1x32xf32>
    %188 = arith.index_cast %c2_i32 : i32 to index
    %c128_88 = arith.constant 128 : index
    %189 = vector.load %arg6[%188, %c128_88] : memref<8x256xf32, #tpu.memory_space<vmem>>, vector<1x32xf32>
    tpu.vector_store %arg6[%188, %c128_88], %187 {strides = array<i32>} : memref<8x256xf32, #tpu.memory_space<vmem>>, vector<1x32xf32>,
    %190 = arith.addi %0, %c2_i32 : i32
    %191 = arith.index_cast %190 : i32 to index
    %c5_89 = arith.constant 5 : index
    %192 = memref.load %arg1[%191, %c5_89] : memref<16x8xi32, #tpu.memory_space<smem>>
    %c0_i32_90 = arith.constant 0 : i32
    %c49_i32_91 = arith.constant 49 : i32
    %193 = arith.maxsi %c0_i32_90, %192 : i32
    %194 = arith.minsi %c49_i32_91, %193 : i32
    %195 = arith.index_cast %194 : i32 to index
    %c0_92 = arith.constant 0 : index
    %196 = vector.load %arg2[%195, %c0_92] : memref<50x32xf32, #tpu.memory_space<vmem>>, vector<1x32xf32>
    %197 = arith.index_cast %c2_i32 : i32 to index
    %c160_93 = arith.constant 160 : index
    %198 = vector.load %arg6[%197, %c160_93] : memref<8x256xf32, #tpu.memory_space<vmem>>, vector<1x32xf32>
    tpu.vector_store %arg6[%197, %c160_93], %196 {strides = array<i32>} : memref<8x256xf32, #tpu.memory_space<vmem>>, vector<1x32xf32>,
    %199 = arith.addi %0, %c2_i32 : i32
    %200 = arith.index_cast %199 : i32 to index
    %c6_94 = arith.constant 6 : index
    %201 = memref.load %arg1[%200, %c6_94] : memref<16x8xi32, #tpu.memory_space<smem>>
    %c0_i32_95 = arith.constant 0 : i32
    %c49_i32_96 = arith.constant 49 : i32
    %202 = arith.maxsi %c0_i32_95, %201 : i32
    %203 = arith.minsi %c49_i32_96, %202 : i32
    %204 = arith.index_cast %203 : i32 to index
    %c0_97 = arith.constant 0 : index
    %205 = vector.load %arg2[%204, %c0_97] : memref<50x32xf32, #tpu.memory_space<vmem>>, vector<1x32xf32>
    %206 = arith.index_cast %c2_i32 : i32 to index
    %c192_98 = arith.constant 192 : index
    %207 = vector.load %arg6[%206, %c192_98] : memref<8x256xf32, #tpu.memory_space<vmem>>, vector<1x32xf32>
    tpu.vector_store %arg6[%206, %c192_98], %205 {strides = array<i32>} : memref<8x256xf32, #tpu.memory_space<vmem>>, vector<1x32xf32>,
    %208 = arith.addi %0, %c2_i32 : i32
    %209 = arith.index_cast %208 : i32 to index
    %c7_99 = arith.constant 7 : index
    %210 = memref.load %arg1[%209, %c7_99] : memref<16x8xi32, #tpu.memory_space<smem>>
    %c0_i32_100 = arith.constant 0 : i32
    %c49_i32_101 = arith.constant 49 : i32
    %211 = arith.maxsi %c0_i32_100, %210 : i32
    %212 = arith.minsi %c49_i32_101, %211 : i32
    %213 = arith.index_cast %212 : i32 to index
    %c0_102 = arith.constant 0 : index
    %214 = vector.load %arg2[%213, %c0_102] : memref<50x32xf32, #tpu.memory_space<vmem>>, vector<1x32xf32>
    %215 = arith.index_cast %c2_i32 : i32 to index
    %c224_103 = arith.constant 224 : index
    %216 = vector.load %arg6[%215, %c224_103] : memref<8x256xf32, #tpu.memory_space<vmem>>, vector<1x32xf32>
    tpu.vector_store %arg6[%215, %c224_103], %214 {strides = array<i32>} : memref<8x256xf32, #tpu.memory_space<vmem>>, vector<1x32xf32>,
    %c3_i32 = arith.constant 3 : i32
    %217 = arith.addi %0, %c3_i32 : i32
    %218 = arith.index_cast %217 : i32 to index
    %c0_104 = arith.constant 0 : index
    %219 = memref.load %arg1[%218, %c0_104] : memref<16x8xi32, #tpu.memory_space<smem>>
    %c0_i32_105 = arith.constant 0 : i32
    %c49_i32_106 = arith.constant 49 : i32
    %220 = arith.maxsi %c0_i32_105, %219 : i32
    %221 = arith.minsi %c49_i32_106, %220 : i32
    %222 = arith.index_cast %221 : i32 to index
    %c0_107 = arith.constant 0 : index
    %223 = vector.load %arg2[%222, %c0_107] : memref<50x32xf32, #tpu.memory_space<vmem>>, vector<1x32xf32>
    %224 = arith.index_cast %c3_i32 : i32 to index
    %c0_108 = arith.constant 0 : index
    %225 = vector.load %arg6[%224, %c0_108] : memref<8x256xf32, #tpu.memory_space<vmem>>, vector<1x32xf32>
    tpu.vector_store %arg6[%224, %c0_108], %223 {strides = array<i32>} : memref<8x256xf32, #tpu.memory_space<vmem>>, vector<1x32xf32>,
    %226 = arith.addi %0, %c3_i32 : i32
    %227 = arith.index_cast %226 : i32 to index
    %c1_109 = arith.constant 1 : index
    %228 = memref.load %arg1[%227, %c1_109] : memref<16x8xi32, #tpu.memory_space<smem>>
    %c0_i32_110 = arith.constant 0 : i32
    %c49_i32_111 = arith.constant 49 : i32
    %229 = arith.maxsi %c0_i32_110, %228 : i32
    %230 = arith.minsi %c49_i32_111, %229 : i32
    %231 = arith.index_cast %230 : i32 to index
    %c0_112 = arith.constant 0 : index
    %232 = vector.load %arg2[%231, %c0_112] : memref<50x32xf32, #tpu.memory_space<vmem>>, vector<1x32xf32>
    %233 = arith.index_cast %c3_i32 : i32 to index
    %c32_113 = arith.constant 32 : index
    %234 = vector.load %arg6[%233, %c32_113] : memref<8x256xf32, #tpu.memory_space<vmem>>, vector<1x32xf32>
    tpu.vector_store %arg6[%233, %c32_113], %232 {strides = array<i32>} : memref<8x256xf32, #tpu.memory_space<vmem>>, vector<1x32xf32>,
    %235 = arith.addi %0, %c3_i32 : i32
    %236 = arith.index_cast %235 : i32 to index
    %c2_114 = arith.constant 2 : index
    %237 = memref.load %arg1[%236, %c2_114] : memref<16x8xi32, #tpu.memory_space<smem>>
    %c0_i32_115 = arith.constant 0 : i32
    %c49_i32_116 = arith.constant 49 : i32
    %238 = arith.maxsi %c0_i32_115, %237 : i32
    %239 = arith.minsi %c49_i32_116, %238 : i32
    %240 = arith.index_cast %239 : i32 to index
    %c0_117 = arith.constant 0 : index
    %241 = vector.load %arg2[%240, %c0_117] : memref<50x32xf32, #tpu.memory_space<vmem>>, vector<1x32xf32>
    %242 = arith.index_cast %c3_i32 : i32 to index
    %c64_118 = arith.constant 64 : index
    %243 = vector.load %arg6[%242, %c64_118] : memref<8x256xf32, #tpu.memory_space<vmem>>, vector<1x32xf32>
    tpu.vector_store %arg6[%242, %c64_118], %241 {strides = array<i32>} : memref<8x256xf32, #tpu.memory_space<vmem>>, vector<1x32xf32>,
    %244 = arith.addi %0, %c3_i32 : i32
    %245 = arith.index_cast %244 : i32 to index
    %c3_119 = arith.constant 3 : index
    %246 = memref.load %arg1[%245, %c3_119] : memref<16x8xi32, #tpu.memory_space<smem>>
    %c0_i32_120 = arith.constant 0 : i32
    %c49_i32_121 = arith.constant 49 : i32
    %247 = arith.maxsi %c0_i32_120, %246 : i32
    %248 = arith.minsi %c49_i32_121, %247 : i32
    %249 = arith.index_cast %248 : i32 to index
    %c0_122 = arith.constant 0 : index
    %250 = vector.load %arg2[%249, %c0_122] : memref<50x32xf32, #tpu.memory_space<vmem>>, vector<1x32xf32>
    %251 = arith.index_cast %c3_i32 : i32 to index
    %c96_123 = arith.constant 96 : index
    %252 = vector.load %arg6[%251, %c96_123] : memref<8x256xf32, #tpu.memory_space<vmem>>, vector<1x32xf32>
    tpu.vector_store %arg6[%251, %c96_123], %250 {strides = array<i32>} : memref<8x256xf32, #tpu.memory_space<vmem>>, vector<1x32xf32>,
    %253 = arith.addi %0, %c3_i32 : i32
    %254 = arith.index_cast %253 : i32 to index
    %c4_124 = arith.constant 4 : index
    %255 = memref.load %arg1[%254, %c4_124] : memref<16x8xi32, #tpu.memory_space<smem>>
    %c0_i32_125 = arith.constant 0 : i32
    %c49_i32_126 = arith.constant 49 : i32
    %256 = arith.maxsi %c0_i32_125, %255 : i32
    %257 = arith.minsi %c49_i32_126, %256 : i32
    %258 = arith.index_cast %257 : i32 to index
    %c0_127 = arith.constant 0 : index
    %259 = vector.load %arg2[%258, %c0_127] : memref<50x32xf32, #tpu.memory_space<vmem>>, vector<1x32xf32>
    %260 = arith.index_cast %c3_i32 : i32 to index
    %c128_128 = arith.constant 128 : index
    %261 = vector.load %arg6[%260, %c128_128] : memref<8x256xf32, #tpu.memory_space<vmem>>, vector<1x32xf32>
    tpu.vector_store %arg6[%260, %c128_128], %259 {strides = array<i32>} : memref<8x256xf32, #tpu.memory_space<vmem>>, vector<1x32xf32>,
    %262 = arith.addi %0, %c3_i32 : i32
    %263 = arith.index_cast %262 : i32 to index
    %c5_129 = arith.constant 5 : index
    %264 = memref.load %arg1[%263, %c5_129] : memref<16x8xi32, #tpu.memory_space<smem>>
    %c0_i32_130 = arith.constant 0 : i32
    %c49_i32_131 = arith.constant 49 : i32
    %265 = arith.maxsi %c0_i32_130, %264 : i32
    %266 = arith.minsi %c49_i32_131, %265 : i32
    %267 = arith.index_cast %266 : i32 to index
    %c0_132 = arith.constant 0 : index
    %268 = vector.load %arg2[%267, %c0_132] : memref<50x32xf32, #tpu.memory_space<vmem>>, vector<1x32xf32>
    %269 = arith.index_cast %c3_i32 : i32 to index
    %c160_133 = arith.constant 160 : index
    %270 = vector.load %arg6[%269, %c160_133] : memref<8x256xf32, #tpu.memory_space<vmem>>, vector<1x32xf32>
    tpu.vector_store %arg6[%269, %c160_133], %268 {strides = array<i32>} : memref<8x256xf32, #tpu.memory_space<vmem>>, vector<1x32xf32>,
    %271 = arith.addi %0, %c3_i32 : i32
    %272 = arith.index_cast %271 : i32 to index
    %c6_134 = arith.constant 6 : index
    %273 = memref.load %arg1[%272, %c6_134] : memref<16x8xi32, #tpu.memory_space<smem>>
    %c0_i32_135 = arith.constant 0 : i32
    %c49_i32_136 = arith.constant 49 : i32
    %274 = arith.maxsi %c0_i32_135, %273 : i32
    %275 = arith.minsi %c49_i32_136, %274 : i32
    %276 = arith.index_cast %275 : i32 to index
    %c0_137 = arith.constant 0 : index
    %277 = vector.load %arg2[%276, %c0_137] : memref<50x32xf32, #tpu.memory_space<vmem>>, vector<1x32xf32>
    %278 = arith.index_cast %c3_i32 : i32 to index
    %c192_138 = arith.constant 192 : index
    %279 = vector.load %arg6[%278, %c192_138] : memref<8x256xf32, #tpu.memory_space<vmem>>, vector<1x32xf32>
    tpu.vector_store %arg6[%278, %c192_138], %277 {strides = array<i32>} : memref<8x256xf32, #tpu.memory_space<vmem>>, vector<1x32xf32>,
    %280 = arith.addi %0, %c3_i32 : i32
    %281 = arith.index_cast %280 : i32 to index
    %c7_139 = arith.constant 7 : index
    %282 = memref.load %arg1[%281, %c7_139] : memref<16x8xi32, #tpu.memory_space<smem>>
    %c0_i32_140 = arith.constant 0 : i32
    %c49_i32_141 = arith.constant 49 : i32
    %283 = arith.maxsi %c0_i32_140, %282 : i32
    %284 = arith.minsi %c49_i32_141, %283 : i32
    %285 = arith.index_cast %284 : i32 to index
    %c0_142 = arith.constant 0 : index
    %286 = vector.load %arg2[%285, %c0_142] : memref<50x32xf32, #tpu.memory_space<vmem>>, vector<1x32xf32>
    %287 = arith.index_cast %c3_i32 : i32 to index
    %c224_143 = arith.constant 224 : index
    %288 = vector.load %arg6[%287, %c224_143] : memref<8x256xf32, #tpu.memory_space<vmem>>, vector<1x32xf32>
    tpu.vector_store %arg6[%287, %c224_143], %286 {strides = array<i32>} : memref<8x256xf32, #tpu.memory_space<vmem>>, vector<1x32xf32>,
    %c4_i32 = arith.constant 4 : i32
    %289 = arith.addi %0, %c4_i32 : i32
    %290 = arith.index_cast %289 : i32 to index
    %c0_144 = arith.constant 0 : index
    %291 = memref.load %arg1[%290, %c0_144] : memref<16x8xi32, #tpu.memory_space<smem>>
    %c0_i32_145 = arith.constant 0 : i32
    %c49_i32_146 = arith.constant 49 : i32
    %292 = arith.maxsi %c0_i32_145, %291 : i32
    %293 = arith.minsi %c49_i32_146, %292 : i32
    %294 = arith.index_cast %293 : i32 to index
    %c0_147 = arith.constant 0 : index
    %295 = vector.load %arg2[%294, %c0_147] : memref<50x32xf32, #tpu.memory_space<vmem>>, vector<1x32xf32>
    %296 = arith.index_cast %c4_i32 : i32 to index
    %c0_148 = arith.constant 0 : index
    %297 = vector.load %arg6[%296, %c0_148] : memref<8x256xf32, #tpu.memory_space<vmem>>, vector<1x32xf32>
    tpu.vector_store %arg6[%296, %c0_148], %295 {strides = array<i32>} : memref<8x256xf32, #tpu.memory_space<vmem>>, vector<1x32xf32>,
    %298 = arith.addi %0, %c4_i32 : i32
    %299 = arith.index_cast %298 : i32 to index
    %c1_149 = arith.constant 1 : index
    %300 = memref.load %arg1[%299, %c1_149] : memref<16x8xi32, #tpu.memory_space<smem>>
    %c0_i32_150 = arith.constant 0 : i32
    %c49_i32_151 = arith.constant 49 : i32
    %301 = arith.maxsi %c0_i32_150, %300 : i32
    %302 = arith.minsi %c49_i32_151, %301 : i32
    %303 = arith.index_cast %302 : i32 to index
    %c0_152 = arith.constant 0 : index
    %304 = vector.load %arg2[%303, %c0_152] : memref<50x32xf32, #tpu.memory_space<vmem>>, vector<1x32xf32>
    %305 = arith.index_cast %c4_i32 : i32 to index
    %c32_153 = arith.constant 32 : index
    %306 = vector.load %arg6[%305, %c32_153] : memref<8x256xf32, #tpu.memory_space<vmem>>, vector<1x32xf32>
    tpu.vector_store %arg6[%305, %c32_153], %304 {strides = array<i32>} : memref<8x256xf32, #tpu.memory_space<vmem>>, vector<1x32xf32>,
    %307 = arith.addi %0, %c4_i32 : i32
    %308 = arith.index_cast %307 : i32 to index
    %c2_154 = arith.constant 2 : index
    %309 = memref.load %arg1[%308, %c2_154] : memref<16x8xi32, #tpu.memory_space<smem>>
    %c0_i32_155 = arith.constant 0 : i32
    %c49_i32_156 = arith.constant 49 : i32
    %310 = arith.maxsi %c0_i32_155, %309 : i32
    %311 = arith.minsi %c49_i32_156, %310 : i32
    %312 = arith.index_cast %311 : i32 to index
    %c0_157 = arith.constant 0 : index
    %313 = vector.load %arg2[%312, %c0_157] : memref<50x32xf32, #tpu.memory_space<vmem>>, vector<1x32xf32>
    %314 = arith.index_cast %c4_i32 : i32 to index
    %c64_158 = arith.constant 64 : index
    %315 = vector.load %arg6[%314, %c64_158] : memref<8x256xf32, #tpu.memory_space<vmem>>, vector<1x32xf32>
    tpu.vector_store %arg6[%314, %c64_158], %313 {strides = array<i32>} : memref<8x256xf32, #tpu.memory_space<vmem>>, vector<1x32xf32>,
    %316 = arith.addi %0, %c4_i32 : i32
    %317 = arith.index_cast %316 : i32 to index
    %c3_159 = arith.constant 3 : index
    %318 = memref.load %arg1[%317, %c3_159] : memref<16x8xi32, #tpu.memory_space<smem>>
    %c0_i32_160 = arith.constant 0 : i32
    %c49_i32_161 = arith.constant 49 : i32
    %319 = arith.maxsi %c0_i32_160, %318 : i32
    %320 = arith.minsi %c49_i32_161, %319 : i32
    %321 = arith.index_cast %320 : i32 to index
    %c0_162 = arith.constant 0 : index
    %322 = vector.load %arg2[%321, %c0_162] : memref<50x32xf32, #tpu.memory_space<vmem>>, vector<1x32xf32>
    %323 = arith.index_cast %c4_i32 : i32 to index
    %c96_163 = arith.constant 96 : index
    %324 = vector.load %arg6[%323, %c96_163] : memref<8x256xf32, #tpu.memory_space<vmem>>, vector<1x32xf32>
    tpu.vector_store %arg6[%323, %c96_163], %322 {strides = array<i32>} : memref<8x256xf32, #tpu.memory_space<vmem>>, vector<1x32xf32>,
    %325 = arith.addi %0, %c4_i32 : i32
    %326 = arith.index_cast %325 : i32 to index
    %c4_164 = arith.constant 4 : index
    %327 = memref.load %arg1[%326, %c4_164] : memref<16x8xi32, #tpu.memory_space<smem>>
    %c0_i32_165 = arith.constant 0 : i32
    %c49_i32_166 = arith.constant 49 : i32
    %328 = arith.maxsi %c0_i32_165, %327 : i32
    %329 = arith.minsi %c49_i32_166, %328 : i32
    %330 = arith.index_cast %329 : i32 to index
    %c0_167 = arith.constant 0 : index
    %331 = vector.load %arg2[%330, %c0_167] : memref<50x32xf32, #tpu.memory_space<vmem>>, vector<1x32xf32>
    %332 = arith.index_cast %c4_i32 : i32 to index
    %c128_168 = arith.constant 128 : index
    %333 = vector.load %arg6[%332, %c128_168] : memref<8x256xf32, #tpu.memory_space<vmem>>, vector<1x32xf32>
    tpu.vector_store %arg6[%332, %c128_168], %331 {strides = array<i32>} : memref<8x256xf32, #tpu.memory_space<vmem>>, vector<1x32xf32>,
    %334 = arith.addi %0, %c4_i32 : i32
    %335 = arith.index_cast %334 : i32 to index
    %c5_169 = arith.constant 5 : index
    %336 = memref.load %arg1[%335, %c5_169] : memref<16x8xi32, #tpu.memory_space<smem>>
    %c0_i32_170 = arith.constant 0 : i32
    %c49_i32_171 = arith.constant 49 : i32
    %337 = arith.maxsi %c0_i32_170, %336 : i32
    %338 = arith.minsi %c49_i32_171, %337 : i32
    %339 = arith.index_cast %338 : i32 to index
    %c0_172 = arith.constant 0 : index
    %340 = vector.load %arg2[%339, %c0_172] : memref<50x32xf32, #tpu.memory_space<vmem>>, vector<1x32xf32>
    %341 = arith.index_cast %c4_i32 : i32 to index
    %c160_173 = arith.constant 160 : index
    %342 = vector.load %arg6[%341, %c160_173] : memref<8x256xf32, #tpu.memory_space<vmem>>, vector<1x32xf32>
    tpu.vector_store %arg6[%341, %c160_173], %340 {strides = array<i32>} : memref<8x256xf32, #tpu.memory_space<vmem>>, vector<1x32xf32>,
    %343 = arith.addi %0, %c4_i32 : i32
    %344 = arith.index_cast %343 : i32 to index
    %c6_174 = arith.constant 6 : index
    %345 = memref.load %arg1[%344, %c6_174] : memref<16x8xi32, #tpu.memory_space<smem>>
    %c0_i32_175 = arith.constant 0 : i32
    %c49_i32_176 = arith.constant 49 : i32
    %346 = arith.maxsi %c0_i32_175, %345 : i32
    %347 = arith.minsi %c49_i32_176, %346 : i32
    %348 = arith.index_cast %347 : i32 to index
    %c0_177 = arith.constant 0 : index
    %349 = vector.load %arg2[%348, %c0_177] : memref<50x32xf32, #tpu.memory_space<vmem>>, vector<1x32xf32>
    %350 = arith.index_cast %c4_i32 : i32 to index
    %c192_178 = arith.constant 192 : index
    %351 = vector.load %arg6[%350, %c192_178] : memref<8x256xf32, #tpu.memory_space<vmem>>, vector<1x32xf32>
    tpu.vector_store %arg6[%350, %c192_178], %349 {strides = array<i32>} : memref<8x256xf32, #tpu.memory_space<vmem>>, vector<1x32xf32>,
    %352 = arith.addi %0, %c4_i32 : i32
    %353 = arith.index_cast %352 : i32 to index
    %c7_179 = arith.constant 7 : index
    %354 = memref.load %arg1[%353, %c7_179] : memref<16x8xi32, #tpu.memory_space<smem>>
    %c0_i32_180 = arith.constant 0 : i32
    %c49_i32_181 = arith.constant 49 : i32
    %355 = arith.maxsi %c0_i32_180, %354 : i32
    %356 = arith.minsi %c49_i32_181, %355 : i32
    %357 = arith.index_cast %356 : i32 to index
    %c0_182 = arith.constant 0 : index
    %358 = vector.load %arg2[%357, %c0_182] : memref<50x32xf32, #tpu.memory_space<vmem>>, vector<1x32xf32>
    %359 = arith.index_cast %c4_i32 : i32 to index
    %c224_183 = arith.constant 224 : index
    %360 = vector.load %arg6[%359, %c224_183] : memref<8x256xf32, #tpu.memory_space<vmem>>, vector<1x32xf32>
    tpu.vector_store %arg6[%359, %c224_183], %358 {strides = array<i32>} : memref<8x256xf32, #tpu.memory_space<vmem>>, vector<1x32xf32>,
    %c5_i32 = arith.constant 5 : i32
    %361 = arith.addi %0, %c5_i32 : i32
    %362 = arith.index_cast %361 : i32 to index
    %c0_184 = arith.constant 0 : index
    %363 = memref.load %arg1[%362, %c0_184] : memref<16x8xi32, #tpu.memory_space<smem>>
    %c0_i32_185 = arith.constant 0 : i32
    %c49_i32_186 = arith.constant 49 : i32
    %364 = arith.maxsi %c0_i32_185, %363 : i32
    %365 = arith.minsi %c49_i32_186, %364 : i32
    %366 = arith.index_cast %365 : i32 to index
    %c0_187 = arith.constant 0 : index
    %367 = vector.load %arg2[%366, %c0_187] : memref<50x32xf32, #tpu.memory_space<vmem>>, vector<1x32xf32>
    %368 = arith.index_cast %c5_i32 : i32 to index
    %c0_188 = arith.constant 0 : index
    %369 = vector.load %arg6[%368, %c0_188] : memref<8x256xf32, #tpu.memory_space<vmem>>, vector<1x32xf32>
    tpu.vector_store %arg6[%368, %c0_188], %367 {strides = array<i32>} : memref<8x256xf32, #tpu.memory_space<vmem>>, vector<1x32xf32>,
    %370 = arith.addi %0, %c5_i32 : i32
    %371 = arith.index_cast %370 : i32 to index
    %c1_189 = arith.constant 1 : index
    %372 = memref.load %arg1[%371, %c1_189] : memref<16x8xi32, #tpu.memory_space<smem>>
    %c0_i32_190 = arith.constant 0 : i32
    %c49_i32_191 = arith.constant 49 : i32
    %373 = arith.maxsi %c0_i32_190, %372 : i32
    %374 = arith.minsi %c49_i32_191, %373 : i32
    %375 = arith.index_cast %374 : i32 to index
    %c0_192 = arith.constant 0 : index
    %376 = vector.load %arg2[%375, %c0_192] : memref<50x32xf32, #tpu.memory_space<vmem>>, vector<1x32xf32>
    %377 = arith.index_cast %c5_i32 : i32 to index
    %c32_193 = arith.constant 32 : index
    %378 = vector.load %arg6[%377, %c32_193] : memref<8x256xf32, #tpu.memory_space<vmem>>, vector<1x32xf32>
    tpu.vector_store %arg6[%377, %c32_193], %376 {strides = array<i32>} : memref<8x256xf32, #tpu.memory_space<vmem>>, vector<1x32xf32>,
    %379 = arith.addi %0, %c5_i32 : i32
    %380 = arith.index_cast %379 : i32 to index
    %c2_194 = arith.constant 2 : index
    %381 = memref.load %arg1[%380, %c2_194] : memref<16x8xi32, #tpu.memory_space<smem>>
    %c0_i32_195 = arith.constant 0 : i32
    %c49_i32_196 = arith.constant 49 : i32
    %382 = arith.maxsi %c0_i32_195, %381 : i32
    %383 = arith.minsi %c49_i32_196, %382 : i32
    %384 = arith.index_cast %383 : i32 to index
    %c0_197 = arith.constant 0 : index
    %385 = vector.load %arg2[%384, %c0_197] : memref<50x32xf32, #tpu.memory_space<vmem>>, vector<1x32xf32>
    %386 = arith.index_cast %c5_i32 : i32 to index
    %c64_198 = arith.constant 64 : index
    %387 = vector.load %arg6[%386, %c64_198] : memref<8x256xf32, #tpu.memory_space<vmem>>, vector<1x32xf32>
    tpu.vector_store %arg6[%386, %c64_198], %385 {strides = array<i32>} : memref<8x256xf32, #tpu.memory_space<vmem>>, vector<1x32xf32>,
    %388 = arith.addi %0, %c5_i32 : i32
    %389 = arith.index_cast %388 : i32 to index
    %c3_199 = arith.constant 3 : index
    %390 = memref.load %arg1[%389, %c3_199] : memref<16x8xi32, #tpu.memory_space<smem>>
    %c0_i32_200 = arith.constant 0 : i32
    %c49_i32_201 = arith.constant 49 : i32
    %391 = arith.maxsi %c0_i32_200, %390 : i32
    %392 = arith.minsi %c49_i32_201, %391 : i32
    %393 = arith.index_cast %392 : i32 to index
    %c0_202 = arith.constant 0 : index
    %394 = vector.load %arg2[%393, %c0_202] : memref<50x32xf32, #tpu.memory_space<vmem>>, vector<1x32xf32>
    %395 = arith.index_cast %c5_i32 : i32 to index
    %c96_203 = arith.constant 96 : index
    %396 = vector.load %arg6[%395, %c96_203] : memref<8x256xf32, #tpu.memory_space<vmem>>, vector<1x32xf32>
    tpu.vector_store %arg6[%395, %c96_203], %394 {strides = array<i32>} : memref<8x256xf32, #tpu.memory_space<vmem>>, vector<1x32xf32>,
    %397 = arith.addi %0, %c5_i32 : i32
    %398 = arith.index_cast %397 : i32 to index
    %c4_204 = arith.constant 4 : index
    %399 = memref.load %arg1[%398, %c4_204] : memref<16x8xi32, #tpu.memory_space<smem>>
    %c0_i32_205 = arith.constant 0 : i32
    %c49_i32_206 = arith.constant 49 : i32
    %400 = arith.maxsi %c0_i32_205, %399 : i32
    %401 = arith.minsi %c49_i32_206, %400 : i32
    %402 = arith.index_cast %401 : i32 to index
    %c0_207 = arith.constant 0 : index
    %403 = vector.load %arg2[%402, %c0_207] : memref<50x32xf32, #tpu.memory_space<vmem>>, vector<1x32xf32>
    %404 = arith.index_cast %c5_i32 : i32 to index
    %c128_208 = arith.constant 128 : index
    %405 = vector.load %arg6[%404, %c128_208] : memref<8x256xf32, #tpu.memory_space<vmem>>, vector<1x32xf32>
    tpu.vector_store %arg6[%404, %c128_208], %403 {strides = array<i32>} : memref<8x256xf32, #tpu.memory_space<vmem>>, vector<1x32xf32>,
    %406 = arith.addi %0, %c5_i32 : i32
    %407 = arith.index_cast %406 : i32 to index
    %c5_209 = arith.constant 5 : index
    %408 = memref.load %arg1[%407, %c5_209] : memref<16x8xi32, #tpu.memory_space<smem>>
    %c0_i32_210 = arith.constant 0 : i32
    %c49_i32_211 = arith.constant 49 : i32
    %409 = arith.maxsi %c0_i32_210, %408 : i32
    %410 = arith.minsi %c49_i32_211, %409 : i32
    %411 = arith.index_cast %410 : i32 to index
    %c0_212 = arith.constant 0 : index
    %412 = vector.load %arg2[%411, %c0_212] : memref<50x32xf32, #tpu.memory_space<vmem>>, vector<1x32xf32>
    %413 = arith.index_cast %c5_i32 : i32 to index
    %c160_213 = arith.constant 160 : index
    %414 = vector.load %arg6[%413, %c160_213] : memref<8x256xf32, #tpu.memory_space<vmem>>, vector<1x32xf32>
    tpu.vector_store %arg6[%413, %c160_213], %412 {strides = array<i32>} : memref<8x256xf32, #tpu.memory_space<vmem>>, vector<1x32xf32>,
    %415 = arith.addi %0, %c5_i32 : i32
    %416 = arith.index_cast %415 : i32 to index
    %c6_214 = arith.constant 6 : index
    %417 = memref.load %arg1[%416, %c6_214] : memref<16x8xi32, #tpu.memory_space<smem>>
    %c0_i32_215 = arith.constant 0 : i32
    %c49_i32_216 = arith.constant 49 : i32
    %418 = arith.maxsi %c0_i32_215, %417 : i32
    %419 = arith.minsi %c49_i32_216, %418 : i32
    %420 = arith.index_cast %419 : i32 to index
    %c0_217 = arith.constant 0 : index
    %421 = vector.load %arg2[%420, %c0_217] : memref<50x32xf32, #tpu.memory_space<vmem>>, vector<1x32xf32>
    %422 = arith.index_cast %c5_i32 : i32 to index
    %c192_218 = arith.constant 192 : index
    %423 = vector.load %arg6[%422, %c192_218] : memref<8x256xf32, #tpu.memory_space<vmem>>, vector<1x32xf32>
    tpu.vector_store %arg6[%422, %c192_218], %421 {strides = array<i32>} : memref<8x256xf32, #tpu.memory_space<vmem>>, vector<1x32xf32>,
    %424 = arith.addi %0, %c5_i32 : i32
    %425 = arith.index_cast %424 : i32 to index
    %c7_219 = arith.constant 7 : index
    %426 = memref.load %arg1[%425, %c7_219] : memref<16x8xi32, #tpu.memory_space<smem>>
    %c0_i32_220 = arith.constant 0 : i32
    %c49_i32_221 = arith.constant 49 : i32
    %427 = arith.maxsi %c0_i32_220, %426 : i32
    %428 = arith.minsi %c49_i32_221, %427 : i32
    %429 = arith.index_cast %428 : i32 to index
    %c0_222 = arith.constant 0 : index
    %430 = vector.load %arg2[%429, %c0_222] : memref<50x32xf32, #tpu.memory_space<vmem>>, vector<1x32xf32>
    %431 = arith.index_cast %c5_i32 : i32 to index
    %c224_223 = arith.constant 224 : index
    %432 = vector.load %arg6[%431, %c224_223] : memref<8x256xf32, #tpu.memory_space<vmem>>, vector<1x32xf32>
    tpu.vector_store %arg6[%431, %c224_223], %430 {strides = array<i32>} : memref<8x256xf32, #tpu.memory_space<vmem>>, vector<1x32xf32>,
    %c6_i32 = arith.constant 6 : i32
    %433 = arith.addi %0, %c6_i32 : i32
    %434 = arith.index_cast %433 : i32 to index
    %c0_224 = arith.constant 0 : index
    %435 = memref.load %arg1[%434, %c0_224] : memref<16x8xi32, #tpu.memory_space<smem>>
    %c0_i32_225 = arith.constant 0 : i32
    %c49_i32_226 = arith.constant 49 : i32
    %436 = arith.maxsi %c0_i32_225, %435 : i32
    %437 = arith.minsi %c49_i32_226, %436 : i32
    %438 = arith.index_cast %437 : i32 to index
    %c0_227 = arith.constant 0 : index
    %439 = vector.load %arg2[%438, %c0_227] : memref<50x32xf32, #tpu.memory_space<vmem>>, vector<1x32xf32>
    %440 = arith.index_cast %c6_i32 : i32 to index
    %c0_228 = arith.constant 0 : index
    %441 = vector.load %arg6[%440, %c0_228] : memref<8x256xf32, #tpu.memory_space<vmem>>, vector<1x32xf32>
    tpu.vector_store %arg6[%440, %c0_228], %439 {strides = array<i32>} : memref<8x256xf32, #tpu.memory_space<vmem>>, vector<1x32xf32>,
    %442 = arith.addi %0, %c6_i32 : i32
    %443 = arith.index_cast %442 : i32 to index
    %c1_229 = arith.constant 1 : index
    %444 = memref.load %arg1[%443, %c1_229] : memref<16x8xi32, #tpu.memory_space<smem>>
    %c0_i32_230 = arith.constant 0 : i32
    %c49_i32_231 = arith.constant 49 : i32
    %445 = arith.maxsi %c0_i32_230, %444 : i32
    %446 = arith.minsi %c49_i32_231, %445 : i32
    %447 = arith.index_cast %446 : i32 to index
    %c0_232 = arith.constant 0 : index
    %448 = vector.load %arg2[%447, %c0_232] : memref<50x32xf32, #tpu.memory_space<vmem>>, vector<1x32xf32>
    %449 = arith.index_cast %c6_i32 : i32 to index
    %c32_233 = arith.constant 32 : index
    %450 = vector.load %arg6[%449, %c32_233] : memref<8x256xf32, #tpu.memory_space<vmem>>, vector<1x32xf32>
    tpu.vector_store %arg6[%449, %c32_233], %448 {strides = array<i32>} : memref<8x256xf32, #tpu.memory_space<vmem>>, vector<1x32xf32>,
    %451 = arith.addi %0, %c6_i32 : i32
    %452 = arith.index_cast %451 : i32 to index
    %c2_234 = arith.constant 2 : index
    %453 = memref.load %arg1[%452, %c2_234] : memref<16x8xi32, #tpu.memory_space<smem>>
    %c0_i32_235 = arith.constant 0 : i32
    %c49_i32_236 = arith.constant 49 : i32
    %454 = arith.maxsi %c0_i32_235, %453 : i32
    %455 = arith.minsi %c49_i32_236, %454 : i32
    %456 = arith.index_cast %455 : i32 to index
    %c0_237 = arith.constant 0 : index
    %457 = vector.load %arg2[%456, %c0_237] : memref<50x32xf32, #tpu.memory_space<vmem>>, vector<1x32xf32>
    %458 = arith.index_cast %c6_i32 : i32 to index
    %c64_238 = arith.constant 64 : index
    %459 = vector.load %arg6[%458, %c64_238] : memref<8x256xf32, #tpu.memory_space<vmem>>, vector<1x32xf32>
    tpu.vector_store %arg6[%458, %c64_238], %457 {strides = array<i32>} : memref<8x256xf32, #tpu.memory_space<vmem>>, vector<1x32xf32>,
    %460 = arith.addi %0, %c6_i32 : i32
    %461 = arith.index_cast %460 : i32 to index
    %c3_239 = arith.constant 3 : index
    %462 = memref.load %arg1[%461, %c3_239] : memref<16x8xi32, #tpu.memory_space<smem>>
    %c0_i32_240 = arith.constant 0 : i32
    %c49_i32_241 = arith.constant 49 : i32
    %463 = arith.maxsi %c0_i32_240, %462 : i32
    %464 = arith.minsi %c49_i32_241, %463 : i32
    %465 = arith.index_cast %464 : i32 to index
    %c0_242 = arith.constant 0 : index
    %466 = vector.load %arg2[%465, %c0_242] : memref<50x32xf32, #tpu.memory_space<vmem>>, vector<1x32xf32>
    %467 = arith.index_cast %c6_i32 : i32 to index
    %c96_243 = arith.constant 96 : index
    %468 = vector.load %arg6[%467, %c96_243] : memref<8x256xf32, #tpu.memory_space<vmem>>, vector<1x32xf32>
    tpu.vector_store %arg6[%467, %c96_243], %466 {strides = array<i32>} : memref<8x256xf32, #tpu.memory_space<vmem>>, vector<1x32xf32>,
    %469 = arith.addi %0, %c6_i32 : i32
    %470 = arith.index_cast %469 : i32 to index
    %c4_244 = arith.constant 4 : index
    %471 = memref.load %arg1[%470, %c4_244] : memref<16x8xi32, #tpu.memory_space<smem>>
    %c0_i32_245 = arith.constant 0 : i32
    %c49_i32_246 = arith.constant 49 : i32
    %472 = arith.maxsi %c0_i32_245, %471 : i32
    %473 = arith.minsi %c49_i32_246, %472 : i32
    %474 = arith.index_cast %473 : i32 to index
    %c0_247 = arith.constant 0 : index
    %475 = vector.load %arg2[%474, %c0_247] : memref<50x32xf32, #tpu.memory_space<vmem>>, vector<1x32xf32>
    %476 = arith.index_cast %c6_i32 : i32 to index
    %c128_248 = arith.constant 128 : index
    %477 = vector.load %arg6[%476, %c128_248] : memref<8x256xf32, #tpu.memory_space<vmem>>, vector<1x32xf32>
    tpu.vector_store %arg6[%476, %c128_248], %475 {strides = array<i32>} : memref<8x256xf32, #tpu.memory_space<vmem>>, vector<1x32xf32>,
    %478 = arith.addi %0, %c6_i32 : i32
    %479 = arith.index_cast %478 : i32 to index
    %c5_249 = arith.constant 5 : index
    %480 = memref.load %arg1[%479, %c5_249] : memref<16x8xi32, #tpu.memory_space<smem>>
    %c0_i32_250 = arith.constant 0 : i32
    %c49_i32_251 = arith.constant 49 : i32
    %481 = arith.maxsi %c0_i32_250, %480 : i32
    %482 = arith.minsi %c49_i32_251, %481 : i32
    %483 = arith.index_cast %482 : i32 to index
    %c0_252 = arith.constant 0 : index
    %484 = vector.load %arg2[%483, %c0_252] : memref<50x32xf32, #tpu.memory_space<vmem>>, vector<1x32xf32>
    %485 = arith.index_cast %c6_i32 : i32 to index
    %c160_253 = arith.constant 160 : index
    %486 = vector.load %arg6[%485, %c160_253] : memref<8x256xf32, #tpu.memory_space<vmem>>, vector<1x32xf32>
    tpu.vector_store %arg6[%485, %c160_253], %484 {strides = array<i32>} : memref<8x256xf32, #tpu.memory_space<vmem>>, vector<1x32xf32>,
    %487 = arith.addi %0, %c6_i32 : i32
    %488 = arith.index_cast %487 : i32 to index
    %c6_254 = arith.constant 6 : index
    %489 = memref.load %arg1[%488, %c6_254] : memref<16x8xi32, #tpu.memory_space<smem>>
    %c0_i32_255 = arith.constant 0 : i32
    %c49_i32_256 = arith.constant 49 : i32
    %490 = arith.maxsi %c0_i32_255, %489 : i32
    %491 = arith.minsi %c49_i32_256, %490 : i32
    %492 = arith.index_cast %491 : i32 to index
    %c0_257 = arith.constant 0 : index
    %493 = vector.load %arg2[%492, %c0_257] : memref<50x32xf32, #tpu.memory_space<vmem>>, vector<1x32xf32>
    %494 = arith.index_cast %c6_i32 : i32 to index
    %c192_258 = arith.constant 192 : index
    %495 = vector.load %arg6[%494, %c192_258] : memref<8x256xf32, #tpu.memory_space<vmem>>, vector<1x32xf32>
    tpu.vector_store %arg6[%494, %c192_258], %493 {strides = array<i32>} : memref<8x256xf32, #tpu.memory_space<vmem>>, vector<1x32xf32>,
    %496 = arith.addi %0, %c6_i32 : i32
    %497 = arith.index_cast %496 : i32 to index
    %c7_259 = arith.constant 7 : index
    %498 = memref.load %arg1[%497, %c7_259] : memref<16x8xi32, #tpu.memory_space<smem>>
    %c0_i32_260 = arith.constant 0 : i32
    %c49_i32_261 = arith.constant 49 : i32
    %499 = arith.maxsi %c0_i32_260, %498 : i32
    %500 = arith.minsi %c49_i32_261, %499 : i32
    %501 = arith.index_cast %500 : i32 to index
    %c0_262 = arith.constant 0 : index
    %502 = vector.load %arg2[%501, %c0_262] : memref<50x32xf32, #tpu.memory_space<vmem>>, vector<1x32xf32>
    %503 = arith.index_cast %c6_i32 : i32 to index
    %c224_263 = arith.constant 224 : index
    %504 = vector.load %arg6[%503, %c224_263] : memref<8x256xf32, #tpu.memory_space<vmem>>, vector<1x32xf32>
    tpu.vector_store %arg6[%503, %c224_263], %502 {strides = array<i32>} : memref<8x256xf32, #tpu.memory_space<vmem>>, vector<1x32xf32>,
    %c7_i32 = arith.constant 7 : i32
    %505 = arith.addi %0, %c7_i32 : i32
    %506 = arith.index_cast %505 : i32 to index
    %c0_264 = arith.constant 0 : index
    %507 = memref.load %arg1[%506, %c0_264] : memref<16x8xi32, #tpu.memory_space<smem>>
    %c0_i32_265 = arith.constant 0 : i32
    %c49_i32_266 = arith.constant 49 : i32
    %508 = arith.maxsi %c0_i32_265, %507 : i32
    %509 = arith.minsi %c49_i32_266, %508 : i32
    %510 = arith.index_cast %509 : i32 to index
    %c0_267 = arith.constant 0 : index
    %511 = vector.load %arg2[%510, %c0_267] : memref<50x32xf32, #tpu.memory_space<vmem>>, vector<1x32xf32>
    %512 = arith.index_cast %c7_i32 : i32 to index
    %c0_268 = arith.constant 0 : index
    %513 = vector.load %arg6[%512, %c0_268] : memref<8x256xf32, #tpu.memory_space<vmem>>, vector<1x32xf32>
    tpu.vector_store %arg6[%512, %c0_268], %511 {strides = array<i32>} : memref<8x256xf32, #tpu.memory_space<vmem>>, vector<1x32xf32>,
    %514 = arith.addi %0, %c7_i32 : i32
    %515 = arith.index_cast %514 : i32 to index
    %c1_269 = arith.constant 1 : index
    %516 = memref.load %arg1[%515, %c1_269] : memref<16x8xi32, #tpu.memory_space<smem>>
    %c0_i32_270 = arith.constant 0 : i32
    %c49_i32_271 = arith.constant 49 : i32
    %517 = arith.maxsi %c0_i32_270, %516 : i32
    %518 = arith.minsi %c49_i32_271, %517 : i32
    %519 = arith.index_cast %518 : i32 to index
    %c0_272 = arith.constant 0 : index
    %520 = vector.load %arg2[%519, %c0_272] : memref<50x32xf32, #tpu.memory_space<vmem>>, vector<1x32xf32>
    %521 = arith.index_cast %c7_i32 : i32 to index
    %c32_273 = arith.constant 32 : index
    %522 = vector.load %arg6[%521, %c32_273] : memref<8x256xf32, #tpu.memory_space<vmem>>, vector<1x32xf32>
    tpu.vector_store %arg6[%521, %c32_273], %520 {strides = array<i32>} : memref<8x256xf32, #tpu.memory_space<vmem>>, vector<1x32xf32>,
    %523 = arith.addi %0, %c7_i32 : i32
    %524 = arith.index_cast %523 : i32 to index
    %c2_274 = arith.constant 2 : index
    %525 = memref.load %arg1[%524, %c2_274] : memref<16x8xi32, #tpu.memory_space<smem>>
    %c0_i32_275 = arith.constant 0 : i32
    %c49_i32_276 = arith.constant 49 : i32
    %526 = arith.maxsi %c0_i32_275, %525 : i32
    %527 = arith.minsi %c49_i32_276, %526 : i32
    %528 = arith.index_cast %527 : i32 to index
    %c0_277 = arith.constant 0 : index
    %529 = vector.load %arg2[%528, %c0_277] : memref<50x32xf32, #tpu.memory_space<vmem>>, vector<1x32xf32>
    %530 = arith.index_cast %c7_i32 : i32 to index
    %c64_278 = arith.constant 64 : index
    %531 = vector.load %arg6[%530, %c64_278] : memref<8x256xf32, #tpu.memory_space<vmem>>, vector<1x32xf32>
    tpu.vector_store %arg6[%530, %c64_278], %529 {strides = array<i32>} : memref<8x256xf32, #tpu.memory_space<vmem>>, vector<1x32xf32>,
    %532 = arith.addi %0, %c7_i32 : i32
    %533 = arith.index_cast %532 : i32 to index
    %c3_279 = arith.constant 3 : index
    %534 = memref.load %arg1[%533, %c3_279] : memref<16x8xi32, #tpu.memory_space<smem>>
    %c0_i32_280 = arith.constant 0 : i32
    %c49_i32_281 = arith.constant 49 : i32
    %535 = arith.maxsi %c0_i32_280, %534 : i32
    %536 = arith.minsi %c49_i32_281, %535 : i32
    %537 = arith.index_cast %536 : i32 to index
    %c0_282 = arith.constant 0 : index
    %538 = vector.load %arg2[%537, %c0_282] : memref<50x32xf32, #tpu.memory_space<vmem>>, vector<1x32xf32>
    %539 = arith.index_cast %c7_i32 : i32 to index
    %c96_283 = arith.constant 96 : index
    %540 = vector.load %arg6[%539, %c96_283] : memref<8x256xf32, #tpu.memory_space<vmem>>, vector<1x32xf32>
    tpu.vector_store %arg6[%539, %c96_283], %538 {strides = array<i32>} : memref<8x256xf32, #tpu.memory_space<vmem>>, vector<1x32xf32>,
    %541 = arith.addi %0, %c7_i32 : i32
    %542 = arith.index_cast %541 : i32 to index
    %c4_284 = arith.constant 4 : index
    %543 = memref.load %arg1[%542, %c4_284] : memref<16x8xi32, #tpu.memory_space<smem>>
    %c0_i32_285 = arith.constant 0 : i32
    %c49_i32_286 = arith.constant 49 : i32
    %544 = arith.maxsi %c0_i32_285, %543 : i32
    %545 = arith.minsi %c49_i32_286, %544 : i32
    %546 = arith.index_cast %545 : i32 to index
    %c0_287 = arith.constant 0 : index
    %547 = vector.load %arg2[%546, %c0_287] : memref<50x32xf32, #tpu.memory_space<vmem>>, vector<1x32xf32>
    %548 = arith.index_cast %c7_i32 : i32 to index
    %c128_288 = arith.constant 128 : index
    %549 = vector.load %arg6[%548, %c128_288] : memref<8x256xf32, #tpu.memory_space<vmem>>, vector<1x32xf32>
    tpu.vector_store %arg6[%548, %c128_288], %547 {strides = array<i32>} : memref<8x256xf32, #tpu.memory_space<vmem>>, vector<1x32xf32>,
    %550 = arith.addi %0, %c7_i32 : i32
    %551 = arith.index_cast %550 : i32 to index
    %c5_289 = arith.constant 5 : index
    %552 = memref.load %arg1[%551, %c5_289] : memref<16x8xi32, #tpu.memory_space<smem>>
    %c0_i32_290 = arith.constant 0 : i32
    %c49_i32_291 = arith.constant 49 : i32
    %553 = arith.maxsi %c0_i32_290, %552 : i32
    %554 = arith.minsi %c49_i32_291, %553 : i32
    %555 = arith.index_cast %554 : i32 to index
    %c0_292 = arith.constant 0 : index
    %556 = vector.load %arg2[%555, %c0_292] : memref<50x32xf32, #tpu.memory_space<vmem>>, vector<1x32xf32>
    %557 = arith.index_cast %c7_i32 : i32 to index
    %c160_293 = arith.constant 160 : index
    %558 = vector.load %arg6[%557, %c160_293] : memref<8x256xf32, #tpu.memory_space<vmem>>, vector<1x32xf32>
    tpu.vector_store %arg6[%557, %c160_293], %556 {strides = array<i32>} : memref<8x256xf32, #tpu.memory_space<vmem>>, vector<1x32xf32>,
    %559 = arith.addi %0, %c7_i32 : i32
    %560 = arith.index_cast %559 : i32 to index
    %c6_294 = arith.constant 6 : index
    %561 = memref.load %arg1[%560, %c6_294] : memref<16x8xi32, #tpu.memory_space<smem>>
    %c0_i32_295 = arith.constant 0 : i32
    %c49_i32_296 = arith.constant 49 : i32
    %562 = arith.maxsi %c0_i32_295, %561 : i32
    %563 = arith.minsi %c49_i32_296, %562 : i32
    %564 = arith.index_cast %563 : i32 to index
    %c0_297 = arith.constant 0 : index
    %565 = vector.load %arg2[%564, %c0_297] : memref<50x32xf32, #tpu.memory_space<vmem>>, vector<1x32xf32>
    %566 = arith.index_cast %c7_i32 : i32 to index
    %c192_298 = arith.constant 192 : index
    %567 = vector.load %arg6[%566, %c192_298] : memref<8x256xf32, #tpu.memory_space<vmem>>, vector<1x32xf32>
    tpu.vector_store %arg6[%566, %c192_298], %565 {strides = array<i32>} : memref<8x256xf32, #tpu.memory_space<vmem>>, vector<1x32xf32>,
    %568 = arith.addi %0, %c7_i32 : i32
    %569 = arith.index_cast %568 : i32 to index
    %c7_299 = arith.constant 7 : index
    %570 = memref.load %arg1[%569, %c7_299] : memref<16x8xi32, #tpu.memory_space<smem>>
    %c0_i32_300 = arith.constant 0 : i32
    %c49_i32_301 = arith.constant 49 : i32
    %571 = arith.maxsi %c0_i32_300, %570 : i32
    %572 = arith.minsi %c49_i32_301, %571 : i32
    %573 = arith.index_cast %572 : i32 to index
    %c0_302 = arith.constant 0 : index
    %574 = vector.load %arg2[%573, %c0_302] : memref<50x32xf32, #tpu.memory_space<vmem>>, vector<1x32xf32>
    %575 = arith.index_cast %c7_i32 : i32 to index
    %c224_303 = arith.constant 224 : index
    %576 = vector.load %arg6[%575, %c224_303] : memref<8x256xf32, #tpu.memory_space<vmem>>, vector<1x32xf32>
    tpu.vector_store %arg6[%575, %c224_303], %574 {strides = array<i32>} : memref<8x256xf32, #tpu.memory_space<vmem>>, vector<1x32xf32>,
    %c8_i32_304 = arith.constant 8 : i32
    %c0_305 = arith.constant 0 : index
    %c0_306 = arith.constant 0 : index
    %577 = vector.load %arg6[%c0_305, %c0_306] : memref<8x256xf32, #tpu.memory_space<vmem>>, vector<8x256xf32>
    %c0_307 = arith.constant 0 : index
    %c0_308 = arith.constant 0 : index
    %578 = vector.load %arg3[%c0_307, %c0_308] : memref<128x256xf32, #tpu.memory_space<vmem>>, vector<128x256xf32>
    %cst = arith.constant dense<0.000000e+00> : vector<8x128xf32>
    %579 = tpu.matmul %577, %578, %cst {dimension_numbers = #tpu.dot_dimension_numbers<[1], [1], [0], [0], [0, 0, 1, 0], [], []>} : vector<8x256xf32>, vector<128x256xf32>, vector<8x128xf32> -> vector<8x128xf32>
    %c0_309 = arith.constant 0 : index
    %c0_310 = arith.constant 0 : index
    %580 = vector.load %arg4[%c0_309, %c0_310] : memref<1x128xf32, #tpu.memory_space<vmem>>, vector<1x128xf32>
    %581 = vector.broadcast %580 : vector<1x128xf32> to vector<8x128xf32>
    %582 = arith.addf %579, %581 : vector<8x128xf32>
    %cst_311 = arith.constant dense<0xFF800000> : vector<8xf32>
    %583 = vector.multi_reduction <maximumf>, %582, %cst_311 [1] : vector<8x128xf32> to vector<8xf32>
    %584 = vector.shape_cast %583 : vector<8xf32> to vector<8x1xf32>
    %585 = vector.broadcast %584 : vector<8x1xf32> to vector<8x128xf32>
    %586 = arith.subf %582, %585 : vector<8x128xf32>
    %587 = math.exp %586 : vector<8x128xf32>
    %cst_312 = arith.constant dense<0.000000e+00> : vector<8xf32>
    %588 = vector.multi_reduction <add>, %587, %cst_312 [1] : vector<8x128xf32> to vector<8xf32>
    %589 = vector.shape_cast %588 : vector<8xf32> to vector<8x1xf32>
    %590 = tpu.reciprocal %589 : vector<8x1xf32> -> vector<8x1xf32>
    %591 = vector.broadcast %590 : vector<8x1xf32> to vector<8x128xf32>
    %592 = arith.mulf %587, %591 : vector<8x128xf32>
    %c0_313 = arith.constant 0 : index
    %c0_314 = arith.constant 0 : index
    %593 = vector.load %arg5[%c0_313, %c0_314] : memref<8x128xf32, #tpu.memory_space<vmem>>, vector<8x128xf32>
    tpu.vector_store %arg5[%c0_313, %c0_314], %592 {strides = array<i32>} : memref<8x128xf32, #tpu.memory_space<vmem>>, vector<8x128xf32>,
    return
  }
  func.func @transform_0(%arg0: i32, %arg1: memref<16x8xi32, #tpu.memory_space<smem>>) -> (i32, i32) {
    %c0_i32 = arith.constant 0 : i32
    %c0_i32_0 = arith.constant 0 : i32
    %c0_i32_1 = arith.constant 0 : i32
    return %c0_i32, %c0_i32_0 : i32, i32
  }
  func.func @transform_1(%arg0: i32, %arg1: memref<16x8xi32, #tpu.memory_space<smem>>) -> (i32, i32) {
    %c0_i32 = arith.constant 0 : i32
    %c0_i32_0 = arith.constant 0 : i32
    %c0_i32_1 = arith.constant 0 : i32
    return %c0_i32, %c0_i32_0 : i32, i32
  }
  func.func @transform_2(%arg0: i32, %arg1: memref<16x8xi32, #tpu.memory_space<smem>>) -> (i32, i32) {
    %c0_i32 = arith.constant 0 : i32
    %c0_i32_0 = arith.constant 0 : i32
    %c0_i32_1 = arith.constant 0 : i32
    return %c0_i32, %c0_i32_0 : i32, i32
  }
  func.func @transform_3(%arg0: i32, %arg1: memref<16x8xi32, #tpu.memory_space<smem>>) -> (i32, i32) {
    %c0_i32 = arith.constant 0 : i32
    %c0_i32_0 = arith.constant 0 : i32
    return %arg0, %c0_i32 : i32, i32
  }
}

</mosaic_0001>

<bundles_post_ra>
// kernel: tpu_custom_call.1
= control target key start
LH: loop header
LB: loop body
LE: loop exit
PB: predicated region body
PF: predicated region fallthrough
CT: control target
= control target key end

     0   :  { %s2670_s0 = inlined_call_operand.vmem [shape: s32[16,8], index: 0, kind: input, shape index: {}]   ;;  %s2671_s1 = inlined_call_operand.vmem [shape: f32[50,32], index: 1, kind: input, shape index: {}]   ;;  %s2672_s2 = inlined_call_operand.hbm [shape: f32[128,256], index: 2, kind: input, shape index: {}]   ;;  %s2673_s3 = inlined_call_operand.vmem [shape: f32[1,128], index: 3, kind: input, shape index: {}]   ;;  %s2674_s4 = inlined_call_operand.hbm [shape: f32[16,128], index: 4, kind: output, shape index: {}]  }
   0x1   :  { %2686 = sst [smem:[#allocation18_spill]] %s2672_s2  ;;  %s9_s17 = sshll.u32 %s2670_s0, 4  ;;  %s10_s17 = int_to_ptr.vmem [resolvable:$true] %s9_s17 }
   0x2   :  { %2687 = sst [smem:[#allocation19_spill]] %s2674_s4  ;;  %s1759_s18 = scalar_lea.vmem %s10_s17, 256 }
   0x3   :  { %p1760_p0 = scmp.ne.s32.totalorder %s10_s17, %s1759_s18  ;;  %p1764_p1 = scmp.lt.s32.totalorder %s10_s17, %s10_s17 }
   0x4   :  { %p1765_p2 = scmp.lt.s32.totalorder %s1759_s18, %s1759_s18 }
   0x6   :  { %p1766_p3 = por %p1765_p2, %p1764_p1 }
   0x8   :  { %p1767_p4 = pnand %p1766_p3, %p1760_p0 }
   0xa   :  { %1770 = shalt.err (!%p1767_p4)  }
   0xb   :  { %s1865_s19 = smov [#allocation4]  }
   0xc   :  { %12 = dma.vmem_to_smem %s10_s17, 256, %s1865_s19, [#allocation3] }
   0xd   :  { %1839 = dma.done.wait [#allocation3], 256 }
   0xe   :  { %1840 = vsyncadd [#allocation3], 4294967040 }
   0xf   :  { %14 = sfence }
  0x10   :  { %15 = vsyncpa [#allocation6], 0 }
  0x11   :  { %16 = vsyncpa [#allocation7], 0 }
  0x12   :  { %18 = vsyncpa [#allocation7 + $0x1], 0  ;;  %s1901_s20 = smov 0   ;;  %s1903_s21 = smov 0  }
  0x13   :  { %s1905_s0 = smov 0   ;;  %s1907_s22 = smov 0  }
  0x14 LB: > { %2688 = sst [smem:[#allocation12_spill]] %s1851_s20  ;;  %s1922_s23 = sadd.s32 4294967295, %s1863_s22   ;;  %s1863_s22 = sphi %s1907_s22, %s2705_s22   ;;  %s1859_s0 = sphi %s1905_s0, %s2707_s0   ;;  %s1855_s21 = sphi %s1903_s21, %s2709_s21   ;;  %s1851_s20 = sphi %s1901_s20, %s2708_s20  }
  0x15   : > { %2689 = sst [smem:[#allocation13_spill]] %s1859_s0  ;;  %s1209_s24 = sadd.s32 4294967294, %s1863_s22  }
  0x16   : > { %2690 = sst [smem:[#allocation14_spill]] %s1863_s22  ;;  %s1926_s25 = sadd.s32 1, %s1863_s22  }
  0x17   : > { %2691 = sst [smem:[#allocation15_spill]] %s1926_s25  ;;  %s94_s26 = sadd.s32 1, %s1859_s0 }
  0x18   : > { %s91_s27 = ssub.s32 %s1863_s22, %s1926_s25  ;;  %p104_p5 = scmp.ne.s32.totalorder %s1859_s0, %s1855_s21 }
  0x19   : > { %p92_p6 = scmp.eq.s32.totalorder %s91_s27, 0  ;;  %p105_p7 = scmp.eq.s32.totalorder %s1922_s23, 1 }
  0x1a   : > { %p110_p8 = scmp.ne.s32.totalorder %s1855_s21, %s1851_s20  ;;  %p111_p9 = scmp.eq.s32.totalorder %s1209_s24, 1 }
  0x1b   : > { %s1937_s28 = scalar_select %p92_p6, %s1859_s0, %s94_s26  }
  0x1c   : > { %p1939_p10 = por %p105_p7, %p104_p5  ;;  %p1943_p11 = por %p111_p9, %p110_p8 }
  0x1d   : > { %2692 = sst [smem:[#allocation16_spill]] %s1937_s28  ;;  %p1210_p12 = scmp.ge.s32.totalorder %s1863_s22, 1 }
  0x1e   : > { %s2694_s30 = scalar_select %p1943_p11, 1, 0 }
  0x1f   : > { %p118_p13 = scmp.lt.s32.totalorder %s1863_s22, 3  ;;  %p1713_p0 = scmp.eq.s32.totalorder %s1922_s23, 0 }
  0x20   : > { %2695 = sst [smem:[#allocation17_spill]] %s2694_s30  ;;  %s1866_s6 = smov [#allocation5]  }
  0x21   : > { %p1950_p1 = pnand %p1210_p12, %p118_p13  ;;  %s133_s7 = sshll.u32 %s1866_s6, 4  ;;  %s134_s7 = int_to_ptr.vmem [resolvable:$true] %s133_s7 }
  0x22   : > { %s1782_s8 = scalar_lea.vmem %s134_s7, 4096  ;;  %p1790_p8 = scmp.lt.s32.totalorder %s134_s7, %s134_s7 }
  0x23   : > { %p1705_p2 = pneg %p1950_p1  ;;  %p1783_p5 = scmp.ne.s32.totalorder %s134_s7, %s1782_s8 }
  0x24   : > { %p1791_p9 = scmp.lt.s32.totalorder %s1782_s8, %s1782_s8 }
  0x25   : > { %p1706_p3 = pnand %p1713_p0, %p1705_p2 }
  0x26   : > { %p1792_p11 = por %p1791_p9, %p1790_p8 }
  0x27   : > { %p1773_p4 = pneg %p1706_p3 }
  0x29   : > { %p1785_p6 = pnand %p1783_p5, %p1773_p4 }
  0x2b   : > { %p1786_p7 = pneg %p1785_p6 }
  0x2d   : > { %p1793_p12 = pnand %p1792_p11, %p1786_p7 }
  0x2f   : > { %1796 = shalt.err (!%p1793_p12)
}
  0x30   : > { %s1867_s9 = smov 256   ;;  %s1868_s10 = smov 16  }
  0x31   : > { %s2697_s2 = sld [smem:[#allocation18_spill]] }
  0x33   : > { %152 = sbr.rel (%p1950_p1) target bundleno = 887 (0x377), region = 32 }
  0x37   : > { %1708 = dma.hbm_to_vmem [thread:$0]  (!%p1706_p3), %s2697_s2, 4096, %s134_s7, [#allocation6], %s1867_s9, %s1867_s9, %s1868_s10  }
  0x38   : > { %1842 = dma.done.wait (%p1713_p0), [#allocation6], 4096  }
  0x39   : > { %1844 = vsyncadd (%p1713_p0), [#allocation6], 4294963200  ;;  %s1968_s13 = sshll.u32 %s1922_s23, 10  ;;  %v984_v33 = vld [vmem:[#allocation5 + $0xf8] sm:$0xff]  ;;  %v983_v34 = vld [vmem:[#allocation5 + $0xf0] sm:$0xff]  ;;  %vm180_vm0 = vcmask 253952  }
  0x3a   : > { %s246_s14 = sadd.s32 6, %s1968_s13  ;;  %s233_s16 = sadd.s32 5, %s1968_s13  ;;  %992 = vmatprep.subr.mxu0 %v984_v33  ;;  %v982_v36 = vld [vmem:[#allocation5 + $0xe8] sm:$0xff]  ;;  %v981_v37 = vld [vmem:[#allocation5 + $0xe0] sm:$0xff]  ;;  %v980_v41 = vld [vmem:[#allocation5 + $0xd8] sm:$0xff]  ;;  %vm194_vm1 = vcmask 516352  }
  0x3b   : > { %s247_s15 = sld [smem:[#allocation4 + %s246_s14]]  ;;  %s1973_s18 = sadd.s32 256, %s1968_s13  ;;  %993 = vmatpush1.xpose.msra.mxu0 %v983_v34  ;;  %v979_v42 = vld [vmem:[#allocation5 + $0xd0] sm:$0xff]  ;;  %v978_v43 = vld [vmem:[#allocation5 + $0xc8] sm:$0xff]  ;;  %v977_v46 = vld [vmem:[#allocation5 + $0xc0] sm:$0xff]  ;;  %vm208_vm2 = vcmask 778752  }
  0x3c   : > { %s234_s17 = sld [smem:[#allocation4 + %s233_s16]]  ;;  %s427_s19 = sadd.s32 5, %s1973_s18  ;;  %994 = vmatprep.subr.mxu0 %v982_v36  ;;  %v976_v47 = vld [vmem:[#allocation5 + $0xb8] sm:$0xff]  ;;  %v975_v50 = vld [vmem:[#allocation5 + $0xb0] sm:$0xff]  ;;  %v974_v51 = vld [vmem:[#allocation5 + $0xa8] sm:$0xff]  ;;  %vm222_vm3 = vcmask 1041152  }
  0x3d   : > { %s182_s24 = sadd.s32 1, %s1968_s13  ;;  %s428_s26 = sld [smem:[#allocation4 + %s427_s19]]  ;;  %v973_v54 = vld [vmem:[#allocation5 + $0xa0] sm:$0xff]  ;;  %v972_v56 = vld [vmem:[#allocation5 + $0x98] sm:$0xff]  ;;  %v971_v59 = vld [vmem:[#allocation5 + $0x90] sm:$0xff] }
  0x3e   : > { %s1978_s27 = sadd.s32 384, %s1968_s13  ;;  %s1980_s5 = sld [smem:[#allocation4 + %s182_s24]]  ;;  %v970_v60 = vld [vmem:[#allocation5 + $0x88] sm:$0xff]  ;;  %v969_v63 = vld [vmem:[#allocation5 + $0x80] sm:$0xff] }
  0x3f   : > { %s524_s6 = sadd.s32 5, %s1978_s27  ;;  %s1986_s8 = sadd.s32 128, %s1968_s13  ;;  %995 = vmatpush1.xpose.msra.mxu0 %v981_v37 }
  0x40   : > { %s1983_s7 = sld [smem:[#allocation4 + %s524_s6]]  ;;  %s2675_s19 = smov 64   ;;  %996 = vmatprep.subr.mxu0 %v980_v41 }
  0x41   : > { %p248_p11 = scmp.gt.s32.totalorder %s247_s15, 0  ;;  %p1247_p13 = scmp.lt.s32.totalorder %s247_s15, 49 }
  0x42   : > { %p235_p0 = scmp.gt.s32.totalorder %s234_s17, 0  ;;  %p1242_p1 = scmp.lt.s32.totalorder %s234_s17, 49 }
  0x43   : > { %s2711_s15 = smov (!%p248_p11, %s247_s15), 0  ;;  %p429_p2 = scmp.gt.s32.totalorder %s428_s26, 0  ;;  %997 = vmatpush1.xpose.msra.mxu0 %v979_v42 }
  0x44   : > { %s2713_s17 = smov (!%p235_p0, %s234_s17), 0  ;;  %s2715_s15 = smov (!%p1247_p13, %s2711_s15), 49  ;;  %998 = vmatprep.subr.mxu0 %v978_v43 }
  0x45   : > { %s2717_s17 = smov (!%p1242_p1, %s2713_s17), 49  ;;  %s252_s11 = scalar_lea.vmem %s2671_s1, %s2715_s15 }
  0x46   : > { %v253_v0 = vld [vmem:[%s252_s11] sm:$0x1]  ;;  %s239_s16 = scalar_lea.vmem %s2671_s1, %s2717_s17  ;;  %p1324_p3 = scmp.lt.s32.totalorder %s428_s26, 49 }
  0x47   : > { %255 = vrot.lane.b32.xlu1 %v253_v0, %s2675_s19  ;;  %v240_v1 = vld [vmem:[%s239_s16] sm:$0x1]  ;;  %s2719_s26 = smov (!%p429_p2, %s428_s26), 0  ;;  %s2682_s24 = smov 32   ;;  %999 = vmatpush1.xpose.msra.mxu0 %v977_v46  ;;  %v968_v0 = vld [vmem:[#allocation5 + $0x78] sm:$0xff] }
  0x48   : > { %242 = vrot.lane.b32.xlu0 %v240_v1, %s2682_s24  ;;  %p184_p4 = scmp.gt.s32.totalorder %s1980_s5, 0  ;;  %p1222_p5 = scmp.lt.s32.totalorder %s1980_s5, 49  ;;  %1000 = vmatprep.subr.mxu0 %v976_v47 }
  0x49   : > { %s2721_s26 = smov (!%p1324_p3, %s2719_s26), 49  ;;  %p526_p6 = scmp.gt.s32.totalorder %s1983_s7, 0 }
  0x4a   : > { %s2723_s5 = smov (!%p184_p4, %s1980_s5), 0  ;;  %s433_s17 = scalar_lea.vmem %s2671_s1, %s2721_s26 }
  0x4b   : > { %v434_v2 = vld [vmem:[%s433_s17] sm:$0x1]  ;;  %s2725_s5 = smov (!%p1222_p5, %s2723_s5), 49  ;;  %p1365_p7 = scmp.lt.s32.totalorder %s1983_s7, 49  ;;  %1001 = vmatpush1.xpose.msra.mxu0 %v975_v50 }
  0x4c   : > { %436 = vrot.lane.b32.xlu1 %v434_v2, %s2682_s24  ;;  %s527_s9 = scalar_select %p526_p6, %s1983_s7, 0  ;;  %1002 = vmatprep.subr.mxu0 %v974_v51  ;;  %v967_v2 = vld [vmem:[#allocation5 + $0x70] sm:$0xff] }
  0x4d   : > { %s188_s12 = scalar_lea.vmem %s2671_s1, %s2725_s5  ;;  %s330_s14 = sadd.s32 5, %s1986_s8 }
  0x4e   : > { %v189_v3 = vld [vmem:[%s188_s12] sm:$0x1]  ;;  %s2011_s16 = sadd.s32 640, %s1968_s13  ;;  %s2727_s9 = smov (!%p1365_p7, %s527_s9), 49 }
  0x4f   : > { %191 = vrot.lane.b32.xlu0 %v189_v3, %s2682_s24  ;;  %s331_s26 = sld [smem:[#allocation4 + %s330_s14]]  ;;  %s718_s15 = sadd.s32 5, %s2011_s16  ;;  %1003 = vmatpush1.xpose.msra.mxu0 %v973_v54 }
  0x50   : > { %s530_s19 = scalar_lea.vmem %s2671_s1, %s2727_s9  ;;  %s719_s2 = sld [smem:[#allocation4 + %s718_s15]]  ;;  %1004 = vmatprep.subr.mxu0 %v972_v56 }
  0x51   : > { %v531_v4 = vld [vmem:[%s530_s19] sm:$0x1]  ;;  %s2019_s10 = sadd.s32 512, %s1968_s13  ;;  %s2022_s5 = sadd.s32 896, %s1968_s13 }
  0x52   : > { %533 = vrot.lane.b32.xlu1 %v531_v4, %s2682_s24  ;;  %s621_s7 = sadd.s32 5, %s2019_s10  ;;  %s912_s11 = sadd.s32 5, %s2022_s5  ;;  %v966_v4 = vld [vmem:[#allocation5 + $0x68] sm:$0xff] }
  0x53   : > { %s622_s12 = sld [smem:[#allocation4 + %s621_s7]]  ;;  %s2028_s28 = sadd.s32 768, %s1968_s13  ;;  %1005 = vmatpush1.xpose.msra.mxu0 %v971_v59 }
  0x54   : > { %s913_s14 = sld [smem:[#allocation4 + %s912_s11]]  ;;  %s815_s0 = sadd.s32 5, %s2028_s28  ;;  %1006 = vmatprep.subr.mxu0 %v970_v60 }
  0x55   : > { %p332_p8 = scmp.gt.s32.totalorder %s331_s26, 0  ;;  %p1283_p9 = scmp.lt.s32.totalorder %s331_s26, 49 }
  0x56   : > { %p720_p12 = scmp.gt.s32.totalorder %s719_s2, 0  ;;  %p1447_p11 = scmp.lt.s32.totalorder %s719_s2, 49 }
  0x57   : > { %s2729_s26 = smov (!%p332_p8, %s331_s26), 0  ;;  %s816_s9 = sld [smem:[#allocation4 + %s815_s0]]  ;;  %1007 = vmatpush1.xpose.msra.mxu0 %v969_v63 }
  0x58   : > { %s2731_s2 = smov (!%p720_p12, %s719_s2), 0  ;;  %s2733_s26 = smov (!%p1283_p9, %s2729_s26), 49  ;;  %1008 = vmatprep.subr.mxu0 %v968_v0 }
  0x59   : > { %s2735_s2 = smov (!%p1447_p11, %s2731_s2), 49  ;;  %s336_s15 = scalar_lea.vmem %s2671_s1, %s2733_s26 }
  0x5a   : > { %p623_p13 = scmp.gt.s32.totalorder %s622_s12, 0  ;;  %v337_v5 = vld [vmem:[%s336_s15] sm:$0x1]  ;;  %s724_s7 = scalar_lea.vmem %s2671_s1, %s2735_s2 }
  0x5b   : > { %p1406_p0 = scmp.lt.s32.totalorder %s622_s12, 49  ;;  %339 = vrot.lane.b32.xlu0 %v337_v5, %s2682_s24  ;;  %v725_v6 = vld [vmem:[%s724_s7] sm:$0x1]  ;;  %p914_p1 = scmp.gt.s32.totalorder %s913_s14, 0  ;;  %1009 = vmatpush1.xpose.msra.mxu0 %v967_v2 }
  0x5c   : > { %s2737_s12 = smov (!%p623_p13, %s622_s12), 0  ;;  %727 = vrot.lane.b32.xlu1 %v725_v6, %s2682_s24  ;;  %p1529_p2 = scmp.lt.s32.totalorder %s913_s14, 49  ;;  %1010 = vmatprep.subr.mxu0 %v966_v4 }
  0x5d   : > { %s2739_s12 = smov (!%p1406_p0, %s2737_s12), 49  ;;  %s2741_s14 = smov (!%p914_p1, %s913_s14), 0 }
  0x5e   : > { %s627_s19 = scalar_lea.vmem %s2671_s1, %s2739_s12  ;;  %s2743_s14 = smov (!%p1529_p2, %s2741_s14), 49 }
  0x5f   : > { %v628_v7 = vld [vmem:[%s627_s19] sm:$0x1]  ;;  %s343_s2 = sadd.s32 6, %s1986_s8  ;;  %s282_s15 = sadd.s32 1, %s1986_s8 }
  0x60   : > { %630 = vrot.lane.b32.xlu0 %v628_v7, %s2682_s24  ;;  %s918_s7 = scalar_lea.vmem %s2671_s1, %s2743_s14  ;;  %s344_s25 = sld [smem:[#allocation4 + %s343_s2]]  ;;  %v965_v7 = vld [vmem:[#allocation5 + $0x60] sm:$0xff] }
  0x61   : > { %v919_v8 = vld [vmem:[%s918_s7] sm:$0x1]  ;;  %s283_s30 = sld [smem:[#allocation4 + %s282_s15]]  ;;  %s440_s20 = sadd.s32 6, %s1973_s18  ;;  %1011 = vmatpush1.xpose.msra.mxu0 %v965_v7 }
  0x62   : > { %921 = vrot.lane.b32.xlu1 %v919_v8, %s2682_s24  ;;  %s441_s26 = sld [smem:[#allocation4 + %s440_s20]]  ;;  %s379_s12 = sadd.s32 1, %s1973_s18  ;;  %v964_v8 = vld [vmem:[#allocation5 + $0x58] sm:$0xff] }
  0x63   : > { %p817_p3 = scmp.gt.s32.totalorder %s816_s9, 0  ;;  %p1488_p4 = scmp.lt.s32.totalorder %s816_s9, 49  ;;  %1012 = vmatprep.subr.mxu0 %v964_v8 }
  0x64   : > { %s2051_s0 = sld [smem:[#allocation4 + %s379_s12]]  ;;  %s537_s11 = sadd.s32 6, %s1978_s27 }
  0x65   : > { %s2745_s9 = smov (!%p817_p3, %s816_s9), 0  ;;  %s2698_s7 = smov 64  }
  0x66   : > { %p345_p5 = scmp.gt.s32.totalorder %s344_s25, 0  ;;  %p1288_p6 = scmp.lt.s32.totalorder %s344_s25, 49 }
  0x67   : > { %s2747_s9 = smov (!%p1488_p4, %s2745_s9), 49  ;;  %p284_p7 = scmp.gt.s32.totalorder %s283_s30, 0 }
  0x68   : > { %s2749_s25 = smov (!%p345_p5, %s344_s25), 0  ;;  %s821_s2 = scalar_lea.vmem %s2671_s1, %s2747_s9 }
  0x69   : > { %v822_v9 = vld [vmem:[%s821_s2] sm:$0x1]  ;;  %s2751_s25 = smov (!%p1288_p6, %s2749_s25), 49  ;;  %p1263_p8 = scmp.lt.s32.totalorder %s283_s30, 49 }
  0x6a   : > { %824 = vrot.lane.b32.xlu0 %v822_v9, %s2682_s24  ;;  %s285_s20 = scalar_select %p284_p7, %s283_s30, 0 }
  0x6b   : > { %s349_s17 = scalar_lea.vmem %s2671_s1, %s2751_s25  ;;  %p442_p9 = scmp.gt.s32.totalorder %s441_s26, 0 }
  0x6c   : > { %v350_v10 = vld [vmem:[%s349_s17] sm:$0x1]  ;;  %p1329_p12 = scmp.lt.s32.totalorder %s441_s26, 49  ;;  %s2753_s20 = smov (!%p1263_p8, %s285_s20), 49 }
  0x6d   : > { %352 = vrot.lane.b32.xlu1 %v350_v10, %s2698_s7  ;;  %s2755_s26 = smov (!%p442_p9, %s441_s26), 0  ;;  %s288_s19 = scalar_lea.vmem %s2671_s1, %s2753_s20 }
  0x6e   : > { %p381_p11 = scmp.gt.s32.totalorder %s2051_s0, 0  ;;  %v289_v11 = vld [vmem:[%s288_s19] sm:$0x1]  ;;  %s2757_s26 = smov (!%p1329_p12, %s2755_s26), 49 }
  0x6f   : > { %291 = vrot.lane.b32.xlu0 %v289_v11, %s2682_s24  ;;  %s446_s2 = scalar_lea.vmem %s2671_s1, %s2757_s26  ;;  %p1304_p13 = scmp.lt.s32.totalorder %s2051_s0, 49  ;;  %v963_v11 = vld [vmem:[#allocation5 + $0x50] sm:$0xff] }
  0x70   : > { %s382_s25 = scalar_select %p381_p11, %s2051_s0, 0  ;;  %v447_v12 = vld [vmem:[%s446_s2] sm:$0x1]  ;;  %1013 = vmatpush1.xpose.msra.mxu0 %v963_v11 }
  0x71   : > { %s538_s15 = sld [smem:[#allocation4 + %s537_s11]]  ;;  %s476_s6 = sadd.s32 1, %s1978_s27  ;;  %449 = vrot.lane.b32.xlu1 %v447_v12, %s2698_s7  ;;  %v962_v12 = vld [vmem:[#allocation5 + $0x48] sm:$0xff] }
  0x72   : > { %s2759_s25 = smov (!%p1304_p13, %s382_s25), 49  ;;  %s477_s20 = sld [smem:[#allocation4 + %s476_s6]]  ;;  %1014 = vmatprep.subr.mxu0 %v962_v12 }
  0x73   : > { %s634_s17 = sadd.s32 6, %s2019_s10  ;;  %s385_s19 = scalar_lea.vmem %s2671_s1, %s2759_s25 }
  0x74   : > { %s635_s24 = sld [smem:[#allocation4 + %s634_s17]]  ;;  %v386_v13 = vld [vmem:[%s385_s19] sm:$0x1]  ;;  %s573_s22 = sadd.s32 1, %s2019_s10 }
  0x75   : > { %s731_s30 = sadd.s32 6, %s2011_s16  ;;  %s2699_s26 = smov 32  }
  0x76   : > { %388 = vrot.lane.b32.xlu0 %v386_v13, %s2699_s26  ;;  %s574_s0 = sld [smem:[#allocation4 + %s573_s22]]  ;;  %s670_s14 = sadd.s32 1, %s2011_s16 }
  0x77   : > { %p539_p0 = scmp.gt.s32.totalorder %s538_s15, 0  ;;  %p1370_p1 = scmp.lt.s32.totalorder %s538_s15, 49 }
  0x78   : > { %s2082_s11 = sld [smem:[#allocation4 + %s731_s30]]  ;;  %s828_s2 = sadd.s32 6, %s2028_s28 }
  0x79   : > { %s2761_s15 = smov (!%p539_p0, %s538_s15), 0  ;;  %p478_p2 = scmp.gt.s32.totalorder %s477_s20, 0 }
  0x7a   : > { %p1345_p3 = scmp.lt.s32.totalorder %s477_s20, 49  ;;  %s2763_s15 = smov (!%p1370_p1, %s2761_s15), 49 }
  0x7b   : > { %s2765_s20 = smov (!%p478_p2, %s477_s20), 0  ;;  %s543_s17 = scalar_lea.vmem %s2671_s1, %s2763_s15 }
  0x7c   : > { %p636_p4 = scmp.gt.s32.totalorder %s635_s24, 0  ;;  %v544_v14 = vld [vmem:[%s543_s17] sm:$0x1]  ;;  %s2767_s20 = smov (!%p1345_p3, %s2765_s20), 49 }
  0x7d   : > { %546 = vrot.lane.b32.xlu1 %v544_v14, %s2698_s7  ;;  %s482_s19 = scalar_lea.vmem %s2671_s1, %s2767_s20  ;;  %p1411_p5 = scmp.lt.s32.totalorder %s635_s24, 49 }
  0x7e   : > { %s637_s22 = scalar_select %p636_p4, %s635_s24, 0  ;;  %v483_v15 = vld [vmem:[%s482_s19] sm:$0x1] }
  0x7f   : > { %p575_p6 = scmp.gt.s32.totalorder %s574_s0, 0  ;;  %p1386_p7 = scmp.lt.s32.totalorder %s574_s0, 49  ;;  %485 = vrot.lane.b32.xlu0 %v483_v15, %s2699_s26  ;;  %v961_v15 = vld [vmem:[#allocation5 + $0x40] sm:$0xff] }
  0x80   : > { %s2769_s22 = smov (!%p1411_p5, %s637_s22), 49  ;;  %p733_p8 = scmp.gt.s32.totalorder %s2082_s11, 0  ;;  %1015 = vmatpush1.xpose.msra.mxu0 %v961_v15 }
  0x81   : > { %s2771_s0 = smov (!%p575_p6, %s574_s0), 0  ;;  %s640_s6 = scalar_lea.vmem %s2671_s1, %s2769_s22 }
  0x82   : > { %v641_v16 = vld [vmem:[%s640_s6] sm:$0x1]  ;;  %s2773_s0 = smov (!%p1386_p7, %s2771_s0), 49  ;;  %p1452_p9 = scmp.lt.s32.totalorder %s2082_s11, 49 }
  0x83   : > { %643 = vrot.lane.b32.xlu1 %v641_v16, %s2698_s7  ;;  %s734_s24 = scalar_select %p733_p8, %s2082_s11, 0 }
  0x84   : > { %s579_s17 = scalar_lea.vmem %s2671_s1, %s2773_s0  ;;  %s671_s9 = sld [smem:[#allocation4 + %s670_s14]] }
  0x85   : > { %v580_v17 = vld [vmem:[%s579_s17] sm:$0x1]  ;;  %s767_s12 = sadd.s32 1, %s2028_s28  ;;  %s2775_s24 = smov (!%p1452_p9, %s734_s24), 49 }
  0x86   : > { %582 = vrot.lane.b32.xlu0 %v580_v17, %s2699_s26  ;;  %s829_s22 = sld [smem:[#allocation4 + %s828_s2]]  ;;  %s925_s19 = sadd.s32 6, %s2022_s5 }
  0x87   : > { %s737_s6 = scalar_lea.vmem %s2671_s1, %s2775_s24  ;;  %s768_s4 = sld [smem:[#allocation4 + %s767_s12]] }
  0x88   : > { %v738_v18 = vld [vmem:[%s737_s6] sm:$0x1]  ;;  %s2113_s0 = sld [smem:[#allocation4 + %s925_s19]]  ;;  %s864_s11 = sadd.s32 1, %s2022_s5 }
  0x89   : > { %740 = vrot.lane.b32.xlu1 %v738_v18, %s2698_s7  ;;  %s2117_s14 = sld [smem:[#allocation4 + %s864_s11]]  ;;  %s259_s20 = sadd.s32 7, %s1968_s13  ;;  %v960_v18 = vld [vmem:[#allocation5 + $0x38] sm:$0xff] }
  0x8a   : > { %p672_p12 = scmp.gt.s32.totalorder %s671_s9, 0  ;;  %p1427_p11 = scmp.lt.s32.totalorder %s671_s9, 49  ;;  %1016 = vmatprep.subr.mxu0 %v960_v18  ;;  %v1544_v18 = vld [vmem:[%s2673_s3] ss:$0 sm:$0xff] }
  0x8b   : > { %s196_s25 = sadd.s32 2, %s1968_s13  ;;  %s356_s19 = sadd.s32 7, %s1986_s8 }
  0x8c   : > { %s2777_s9 = smov (!%p672_p12, %s671_s9), 0  ;;  %p830_p13 = scmp.gt.s32.totalorder %s829_s22, 0 }
  0x8d   : > { %p1493_p0 = scmp.lt.s32.totalorder %s829_s22, 49  ;;  %s2779_s9 = smov (!%p1427_p11, %s2777_s9), 49 }
  0x8e   : > { %s2781_s22 = smov (!%p830_p13, %s829_s22), 0  ;;  %s676_s17 = scalar_lea.vmem %s2671_s1, %s2779_s9 }
  0x8f   : > { %p769_p1 = scmp.gt.s32.totalorder %s768_s4, 0  ;;  %v677_v19 = vld [vmem:[%s676_s17] sm:$0x1]  ;;  %s2783_s22 = smov (!%p1493_p0, %s2781_s22), 49 }
  0x90   : > { %679 = vrot.lane.b32.xlu0 %v677_v19, %s2699_s26  ;;  %s834_s30 = scalar_lea.vmem %s2671_s1, %s2783_s22  ;;  %p1468_p2 = scmp.lt.s32.totalorder %s768_s4, 49 }
  0x91   : > { %s770_s12 = scalar_select %p769_p1, %s768_s4, 0  ;;  %v835_v20 = vld [vmem:[%s834_s30] sm:$0x1] }
  0x92   : > { %p927_p3 = scmp.gt.s32.totalorder %s2113_s0, 0  ;;  %p1534_p4 = scmp.lt.s32.totalorder %s2113_s0, 49  ;;  %837 = vrot.lane.b32.xlu1 %v835_v20, %s2698_s7  ;;  %v959_v20 = vld [vmem:[#allocation5 + $0x30] sm:$0xff] }
  0x93   : > { %s2785_s12 = smov (!%p1468_p2, %s770_s12), 49  ;;  %p866_p5 = scmp.gt.s32.totalorder %s2117_s14, 0  ;;  %1017 = vmatpush1.xpose.msra.mxu0 %v959_v20 }
  0x94   : > { %s2787_s0 = smov (!%p927_p3, %s2113_s0), 0  ;;  %s773_s11 = scalar_lea.vmem %s2671_s1, %s2785_s12 }
  0x95   : > { %v774_v21 = vld [vmem:[%s773_s11] sm:$0x1]  ;;  %s2789_s0 = smov (!%p1534_p4, %s2787_s0), 49  ;;  %p1509_p6 = scmp.lt.s32.totalorder %s2117_s14, 49 }
  0x96   : > { %776 = vrot.lane.b32.xlu0 %v774_v21, %s2699_s26  ;;  %s867_s4 = scalar_select %p866_p5, %s2117_s14, 0 }
  0x97   : > { %s931_s24 = scalar_lea.vmem %s2671_s1, %s2789_s0  ;;  %s260_s17 = sld [smem:[#allocation4 + %s259_s20]] }
  0x98   : > { %v932_v22 = vld [vmem:[%s931_s24] sm:$0x1]  ;;  %s2791_s4 = smov (!%p1509_p6, %s867_s4), 49  ;;  %s197_s12 = sld [smem:[#allocation4 + %s196_s25]] }
  0x99   : > { %934 = vrot.lane.b32.xlu1 %v932_v22, %s2698_s7  ;;  %s295_s15 = sadd.s32 2, %s1986_s8  ;;  %s870_s6 = scalar_lea.vmem %s2671_s1, %s2791_s4  ;;  %v958_v22 = vld [vmem:[#allocation5 + $0x28] sm:$0xff] }
  0x9a   : > { %s2152_s11 = sld [smem:[#allocation4 + %s356_s19]]  ;;  %v871_v23 = vld [vmem:[%s870_s6] sm:$0x1]  ;;  %s453_s14 = sadd.s32 7, %s1973_s18  ;;  %1018 = vmatprep.subr.mxu0 %v958_v22 }
  0x9b   : > { %s2154_s0 = sld [smem:[#allocation4 + %s295_s15]]  ;;  %873 = vrot.lane.b32.xlu0 %v871_v23, %s2699_s26  ;;  %s392_s22 = sadd.s32 2, %s1973_s18 }
  0x9c   : > { %s2158_s20 = sld [smem:[#allocation4 + %s453_s14]]  ;;  %s550_s2 = sadd.s32 7, %s1978_s27 }
  0x9d   : > { %p261_p7 = scmp.gt.s32.totalorder %s260_s17, 0  ;;  %p1252_p8 = scmp.lt.s32.totalorder %s260_s17, 49 }
  0x9e   : > { %s2161_s25 = sld [smem:[#allocation4 + %s392_s22]]  ;;  %p198_p9 = scmp.gt.s32.totalorder %s197_s12, 0 }
  0x9f   : > { %s2793_s17 = smov (!%p261_p7, %s260_s17), 0  ;;  %p1227_p12 = scmp.lt.s32.totalorder %s197_s12, 49 }
  0xa0   : > { %s2795_s17 = smov (!%p1252_p8, %s2793_s17), 49  ;;  %s2797_s12 = smov (!%p198_p9, %s197_s12), 0 }
  0xa1   : > { %s265_s24 = scalar_lea.vmem %s2671_s1, %s2795_s17  ;;  %p358_p11 = scmp.gt.s32.totalorder %s2152_s11, 0 }
  0xa2   : > { %v266_v24 = vld [vmem:[%s265_s24] sm:$0x1]  ;;  %s2799_s12 = smov (!%p1227_p12, %s2797_s12), 49  ;;  %s1871_s19 = smov 96  }
  0xa3   : > { %268 = vrot.lane.b32.xlu1 %v266_v24, %s1871_s19  ;;  %s359_s15 = scalar_select %p358_p11, %s2152_s11, 0 }
  0xa4   : > { %s202_s6 = scalar_lea.vmem %s2671_s1, %s2799_s12  ;;  %p1293_p13 = scmp.lt.s32.totalorder %s2152_s11, 49 }
  0xa5   : > { %v203_v25 = vld [vmem:[%s202_s6] sm:$0x1]  ;;  %p297_p0 = scmp.gt.s32.totalorder %s2154_s0, 0  ;;  %p1268_p1 = scmp.lt.s32.totalorder %s2154_s0, 49 }
  0xa6   : > { %205 = vrot.lane.b32.xlu0 %v203_v25, %s2698_s7  ;;  %s2801_s15 = smov (!%p1293_p13, %s359_s15), 49  ;;  %p455_p2 = scmp.gt.s32.totalorder %s2158_s20, 0  ;;  %v957_v25 = vld [vmem:[#allocation5 + $0x20] sm:$0xff] }
  0xa7   : > { %s2803_s0 = smov (!%p297_p0, %s2154_s0), 0  ;;  %s362_s22 = scalar_lea.vmem %s2671_s1, %s2801_s15  ;;  %1019 = vmatpush1.xpose.msra.mxu0 %v957_v25 }
  0xa8   : > { %v363_v26 = vld [vmem:[%s362_s22] sm:$0x1]  ;;  %s2805_s0 = smov (!%p1268_p1, %s2803_s0), 49  ;;  %p1334_p3 = scmp.lt.s32.totalorder %s2158_s20, 49 }
  0xa9   : > { %365 = vrot.lane.b32.xlu1 %v363_v26, %s1871_s19  ;;  %s456_s12 = scalar_select %p455_p2, %s2158_s20, 0  ;;  %v956_v26 = vld [vmem:[#allocation5 + $0x18] sm:$0xff] }
  0xaa   : > { %s301_s26 = scalar_lea.vmem %s2671_s1, %s2805_s0  ;;  %p394_p4 = scmp.gt.s32.totalorder %s2161_s25, 0  ;;  %1020 = vmatprep.subr.mxu0 %v956_v26 }
  0xab   : > { %v302_v27 = vld [vmem:[%s301_s26] sm:$0x1]  ;;  %p1309_p5 = scmp.lt.s32.totalorder %s2161_s25, 49  ;;  %s2807_s12 = smov (!%p1334_p3, %s456_s12), 49 }
  0xac   : > { %304 = vrot.lane.b32.xlu0 %v302_v27, %s2698_s7  ;;  %s2809_s25 = smov (!%p394_p4, %s2161_s25), 0  ;;  %s459_s30 = scalar_lea.vmem %s2671_s1, %s2807_s12 }
  0xad   : > { %s551_s9 = sld [smem:[#allocation4 + %s550_s2]]  ;;  %v460_v28 = vld [vmem:[%s459_s30] sm:$0x1]  ;;  %s2811_s25 = smov (!%p1309_p5, %s2809_s25), 49 }
  0xae   : > { %462 = vrot.lane.b32.xlu1 %v460_v28, %s1871_s19  ;;  %s489_s0 = sadd.s32 2, %s1978_s27  ;;  %s647_s20 = sadd.s32 7, %s2019_s10  ;;  %v955_v28 = vld [vmem:[#allocation5 + $0x10] sm:$0xff] }
  0xaf   : > { %s398_s14 = scalar_lea.vmem %s2671_s1, %s2811_s25  ;;  %s490_s22 = sld [smem:[#allocation4 + %s489_s0]]  ;;  %1021 = vmatpush1.xpose.msra.mxu0 %v955_v28 }
  0xb0   : > { %v399_v29 = vld [vmem:[%s398_s14] sm:$0x1]  ;;  %s648_s11 = sld [smem:[#allocation4 + %s647_s20]]  ;;  %s586_s4 = sadd.s32 2, %s2019_s10 }
  0xb1   : > { %401 = vrot.lane.b32.xlu0 %v399_v29, %s2698_s7  ;;  %s587_s12 = sld [smem:[#allocation4 + %s586_s4]]  ;;  %s744_s26 = sadd.s32 7, %s2011_s16 }
  0xb2   : > { %s2206_s2 = sld [smem:[#allocation4 + %s744_s26]]  ;;  %s683_s24 = sadd.s32 2, %s2011_s16 }
  0xb3   : > { %p552_p6 = scmp.gt.s32.totalorder %s551_s9, 0  ;;  %p1375_p7 = scmp.lt.s32.totalorder %s551_s9, 49 }
  0xb4   : > { %s684_s25 = sld [smem:[#allocation4 + %s683_s24]]  ;;  %s780_s20 = sadd.s32 2, %s2028_s28 }
  0xb5   : > { %s2813_s9 = smov (!%p552_p6, %s551_s9), 0  ;;  %p491_p8 = scmp.gt.s32.totalorder %s490_s22, 0 }
  0xb6   : > { %p1350_p9 = scmp.lt.s32.totalorder %s490_s22, 49  ;;  %s2815_s9 = smov (!%p1375_p7, %s2813_s9), 49 }
  0xb7   : > { %s2817_s22 = smov (!%p491_p8, %s490_s22), 0  ;;  %s556_s30 = scalar_lea.vmem %s2671_s1, %s2815_s9 }
  0xb8   : > { %p649_p12 = scmp.gt.s32.totalorder %s648_s11, 0  ;;  %v557_v30 = vld [vmem:[%s556_s30] sm:$0x1]  ;;  %s2819_s22 = smov (!%p1350_p9, %s2817_s22), 49 }
  0xb9   : > { %559 = vrot.lane.b32.xlu1 %v557_v30, %s1871_s19  ;;  %s495_s17 = scalar_lea.vmem %s2671_s1, %s2819_s22  ;;  %p1416_p11 = scmp.lt.s32.totalorder %s648_s11, 49  ;;  %v2248_v39 = vpop.permute.xlu1 %255  ;;  %v954_v30 = vld [vmem:[#allocation5 + $0x8] sm:$0xff] }
  0xba   : > { %s650_s0 = scalar_select %p649_p12, %s648_s11, 0  ;;  %v496_v31 = vld [vmem:[%s495_s17] sm:$0x1]  ;;  %v2252_v40 = vpop.permute.xlu0 %242  ;;  %1022 = vmatprep.subr.mxu0 %v954_v30 }
  0xbb   : > { %p588_p13 = scmp.gt.s32.totalorder %s587_s12, 0  ;;  %p1391_p0 = scmp.lt.s32.totalorder %s587_s12, 49  ;;  %498 = vrot.lane.b32.xlu0 %v496_v31, %s2698_s7 }
  0xbc   : > { %s2821_s0 = smov (!%p1416_p11, %s650_s0), 49  ;;  %p746_p1 = scmp.gt.s32.totalorder %s2206_s2, 0 }
  0xbd   : > { %s2823_s12 = smov (!%p588_p13, %s587_s12), 0  ;;  %s653_s4 = scalar_lea.vmem %s2671_s1, %s2821_s0 }
  0xbe   : > { %v654_v32 = vld [vmem:[%s653_s4] sm:$0x1]  ;;  %s2825_s12 = smov (!%p1391_p0, %s2823_s12), 49  ;;  %p1457_p2 = scmp.lt.s32.totalorder %s2206_s2, 49  ;;  %v2259_v45 = vpop.permute.xlu1 %436 }
  0xbf   : > { %656 = vrot.lane.b32.xlu1 %v654_v32, %s1871_s19  ;;  %s747_s22 = scalar_select %p746_p1, %s2206_s2, 0  ;;  %v953_v32 = vld [vmem:[#allocation5] sm:$0xff] }
  0xc0   : > { %s592_s15 = scalar_lea.vmem %s2671_s1, %s2825_s12  ;;  %s841_s30 = sadd.s32 7, %s2028_s28  ;;  %1023 = vmatpush1.xpose.msra.mxu0 %v953_v32 }
  0xc1   : > { %v593_v35 = vld [vmem:[%s592_s15] sm:$0x1]  ;;  %s2827_s22 = smov (!%p1457_p2, %s747_s22), 49  ;;  %s2231_s0 = sld [smem:[#allocation4 + %s841_s30]]  ;;  %v2269_v49 = vpop.permute.xlu0 %191 }
  0xc2   : > { %595 = vrot.lane.b32.xlu0 %v593_v35, %s2698_s7  ;;  %s750_s6 = scalar_lea.vmem %s2671_s1, %s2827_s22  ;;  %s2237_s17 = sld [smem:[#allocation4 + %s780_s20]] }
  0xc3   : > { %v751_v38 = vld [vmem:[%s750_s6] sm:$0x1]  ;;  %s938_s24 = sadd.s32 7, %s2022_s5  ;;  %s877_s9 = sadd.s32 2, %s2022_s5 }
  0xc4   : > { %753 = vrot.lane.b32.xlu1 %v751_v38, %s1871_s19  ;;  %s2242_s14 = sld [smem:[#allocation4 + %s938_s24]]  ;;  %s308_s4 = sadd.s32 3, %s1986_s8  ;;  %v2277_v52 = vpop.permute.xlu1 %533 }
  0xc5   : > { %p685_p3 = scmp.gt.s32.totalorder %s684_s25, 0  ;;  %p1432_p4 = scmp.lt.s32.totalorder %s684_s25, 49 }
  0xc6   : > { %s2245_s11 = sld [smem:[#allocation4 + %s877_s9]]  ;;  %s210_s22 = sadd.s32 3, %s1968_s13 }
  0xc7   : > { %s2829_s25 = smov (!%p685_p3, %s684_s25), 0  ;;  %p843_p5 = scmp.gt.s32.totalorder %s2231_s0, 0 }
  0xc8   : > { %p1498_p6 = scmp.lt.s32.totalorder %s2231_s0, 49  ;;  %s2831_s25 = smov (!%p1432_p4, %s2829_s25), 49 }
  0xc9   : > { %s2833_s0 = smov (!%p843_p5, %s2231_s0), 0  ;;  %s689_s30 = scalar_lea.vmem %s2671_s1, %s2831_s25 }
  0xca   : > { %p782_p7 = scmp.gt.s32.totalorder %s2237_s17, 0  ;;  %v690_v44 = vld [vmem:[%s689_s30] sm:$0x1]  ;;  %s2835_s0 = smov (!%p1498_p6, %s2833_s0), 49 }
  0xcb   : > { %692 = vrot.lane.b32.xlu0 %v690_v44, %s2698_s7  ;;  %s847_s6 = scalar_lea.vmem %s2671_s1, %s2835_s0  ;;  %p1473_p8 = scmp.lt.s32.totalorder %s2237_s17, 49 }
  0xcc   : > { %s783_s20 = scalar_select %p782_p7, %s2237_s17, 0  ;;  %v848_v48 = vld [vmem:[%s847_s6] sm:$0x1] }
  0xcd   : > { %p940_p9 = scmp.gt.s32.totalorder %s2242_s14, 0  ;;  %p1539_p12 = scmp.lt.s32.totalorder %s2242_s14, 49  ;;  %850 = vrot.lane.b32.xlu1 %v848_v48, %s1871_s19  ;;  %v2285_v55 = vpop.permute.xlu0 %339 }
  0xce   : > { %s2837_s20 = smov (!%p1473_p8, %s783_s20), 49  ;;  %p879_p11 = scmp.gt.s32.totalorder %s2245_s11, 0  ;;  %v2298_v58 = vpop.permute.xlu1 %727 }
  0xcf   : > { %s2839_s14 = smov (!%p940_p9, %s2242_s14), 0  ;;  %s786_s0 = scalar_lea.vmem %s2671_s1, %s2837_s20 }
  0xd0   : > { %v787_v53 = vld [vmem:[%s786_s0] sm:$0x1]  ;;  %s2841_s14 = smov (!%p1539_p12, %s2839_s14), 49  ;;  %p1514_p13 = scmp.lt.s32.totalorder %s2245_s11, 49 }
  0xd1   : > { %789 = vrot.lane.b32.xlu0 %v787_v53, %s2698_s7  ;;  %s880_s17 = scalar_select %p879_p11, %s2245_s11, 0 }
  0xd2   : > { %s944_s15 = scalar_lea.vmem %s2671_s1, %s2841_s14  ;;  %s2289_s30 = sld [smem:[#allocation4 + %s308_s4]]  ;;  %v2312_v62 = vpop.permute.xlu0 %630 }
  0xd3   : > { %v945_v57 = vld [vmem:[%s944_s15] sm:$0x1]  ;;  %s502_s20 = sadd.s32 3, %s1978_s27  ;;  %s2843_s17 = smov (!%p1514_p13, %s880_s17), 49 }
  0xd4   : > { %947 = vrot.lane.b32.xlu1 %v945_v57, %s1871_s19  ;;  %s2295_s12 = sld [smem:[#allocation4 + %s210_s22]]  ;;  %s405_s14 = sadd.s32 3, %s1973_s18  ;;  %v2320_v1 = vpop.permute.xlu1 %921 }
  0xd5   : > { %s883_s4 = scalar_lea.vmem %s2671_s1, %s2843_s17  ;;  %s2303_s6 = sld [smem:[#allocation4 + %s502_s20]] }
  0xd6   : > { %v884_v61 = vld [vmem:[%s883_s4] sm:$0x1]  ;;  %s2305_s25 = sld [smem:[#allocation4 + %s405_s14]]  ;;  %s696_s22 = sadd.s32 3, %s2011_s16 }
  0xd7   : > { %886 = vrot.lane.b32.xlu0 %v884_v61, %s2698_s7  ;;  %s2309_s24 = sld [smem:[#allocation4 + %s696_s22]]  ;;  %s599_s0 = sadd.s32 3, %s2019_s10 }
  0xd8   : > { %p310_p0 = scmp.gt.s32.totalorder %s2289_s30, 0  ;;  %p1273_p1 = scmp.lt.s32.totalorder %s2289_s30, 49 }
  0xd9   : > { %s2316_s17 = sld [smem:[#allocation4 + %s599_s0]]  ;;  %s890_s9 = sadd.s32 3, %s2022_s5 }
  0xda   : > { %s2845_s30 = smov (!%p310_p0, %s2289_s30), 0  ;;  %p212_p2 = scmp.gt.s32.totalorder %s2295_s12, 0 }
  0xdb   : > { %p1232_p3 = scmp.lt.s32.totalorder %s2295_s12, 49  ;;  %s2847_s30 = smov (!%p1273_p1, %s2845_s30), 49 }
  0xdc   : > { %s2849_s12 = smov (!%p212_p2, %s2295_s12), 0  ;;  %v2325_v3 = vpop.permute.xlu0 %824  ;;  %s314_s15 = scalar_lea.vmem %s2671_s1, %s2847_s30 }
  0xdd   : > { %p504_p4 = scmp.gt.s32.totalorder %s2303_s6, 0  ;;  %v315_v5 = vld [vmem:[%s314_s15] sm:$0x1]  ;;  %s2851_s12 = smov (!%p1232_p3, %s2849_s12), 49 }
  0xde   : > { %317 = vrot.lane.b32.xlu1 %v315_v5, %s1871_s19  ;;  %s216_s2 = scalar_lea.vmem %s2671_s1, %s2851_s12  ;;  %p1355_p5 = scmp.lt.s32.totalorder %s2303_s6, 49 }
  0xdf   : > { %s505_s20 = scalar_select %p504_p4, %s2303_s6, 0  ;;  %v2333_v6 = vpop.permute.xlu1 %352  ;;  %v217_v9 = vld [vmem:[%s216_s2] sm:$0x1] }
  0xe0   : > { %p407_p6 = scmp.gt.s32.totalorder %s2305_s25, 0  ;;  %p1314_p7 = scmp.lt.s32.totalorder %s2305_s25, 49  ;;  %219 = vrot.lane.b32.xlu0 %v217_v9, %s1871_s19 }
  0xe1   : > { %s2853_s20 = smov (!%p1355_p5, %s505_s20), 49  ;;  %v2342_v10 = vpop.permute.xlu0 %291  ;;  %p698_p8 = scmp.gt.s32.totalorder %s2309_s24, 0 }
  0xe2   : > { %s2855_s25 = smov (!%p407_p6, %s2305_s25), 0  ;;  %s508_s12 = scalar_lea.vmem %s2671_s1, %s2853_s20 }
  0xe3   : > { %v509_v13 = vld [vmem:[%s508_s12] sm:$0x1]  ;;  %s2857_s25 = smov (!%p1314_p7, %s2855_s25), 49  ;;  %v2349_v14 = vpop.permute.xlu1 %449  ;;  %p1437_p9 = scmp.lt.s32.totalorder %s2309_s24, 49 }
  0xe4   : > { %511 = vrot.lane.b32.xlu1 %v509_v13, %s1871_s19  ;;  %s699_s6 = scalar_select %p698_p8, %s2309_s24, 0 }
  0xe5   : > { %s411_s7 = scalar_lea.vmem %s2671_s1, %s2857_s25  ;;  %p601_p12 = scmp.gt.s32.totalorder %s2316_s17, 0 }
  0xe6   : > { %v412_v16 = vld [vmem:[%s411_s7] sm:$0x1]  ;;  %p1396_p11 = scmp.lt.s32.totalorder %s2316_s17, 49  ;;  %s2859_s6 = smov (!%p1437_p9, %s699_s6), 49 }
  0xe7   : > { %414 = vrot.lane.b32.xlu0 %v412_v16, %s1871_s19  ;;  %s2861_s17 = smov (!%p601_p12, %s2316_s17), 0  ;;  %s702_s25 = scalar_lea.vmem %s2671_s1, %s2859_s6 }
  0xe8   : > { %v2359_v17 = vpop.permute.xlu0 %388  ;;  %s2368_s24 = sld [smem:[#allocation4 + %s890_s9]]  ;;  %v703_v21 = vld [vmem:[%s702_s25] sm:$0x1]  ;;  %s2863_s17 = smov (!%p1396_p11, %s2861_s17), 49 }
  0xe9   : > { %705 = vrot.lane.b32.xlu1 %v703_v21, %s1871_s19  ;;  %s793_s20 = sadd.s32 3, %s2028_s28  ;;  %s224_s14 = sadd.s32 4, %s1968_s13 }
  0xea   : > { %s605_s9 = scalar_lea.vmem %s2671_s1, %s2863_s17  ;;  %s2378_s30 = sld [smem:[#allocation4 + %s793_s20]] }
  0xeb   : > { %v606_v24 = vld [vmem:[%s605_s9] sm:$0x1]  ;;  %s2382_s4 = sld [smem:[#allocation4 + %s224_s14]]  ;;  %s418_s12 = sadd.s32 4, %s1973_s18 }
  0xec   : > { %608 = vrot.lane.b32.xlu0 %v606_v24, %s1871_s19  ;;  %s2386_s6 = sld [smem:[#allocation4 + %s418_s12]]  ;;  %s515_s17 = sadd.s32 4, %s1978_s27 }
  0xed   : > { %s2394_s22 = sld [smem:[#allocation4 + %s1968_s13]]  ;;  %s321_s0 = sadd.s32 4, %s1986_s8 }
  0xee   : > { %p892_p13 = scmp.gt.s32.totalorder %s2368_s24, 0  ;;  %p1519_p0 = scmp.lt.s32.totalorder %s2368_s24, 49 }
  0xef   : > { %v2370_v19 = vpop.permute.xlu1 %546  ;;  %s2439_s12 = sld [smem:[#allocation4 + %s515_s17]]  ;;  %s709_s7 = sadd.s32 4, %s2011_s16 }
  0xf0   : > { %s2865_s24 = smov (!%p892_p13, %s2368_s24), 0  ;;  %p795_p1 = scmp.gt.s32.totalorder %s2378_s30, 0 }
  0xf1   : > { %v2380_v23 = vpop.permute.xlu0 %485  ;;  %p1478_p2 = scmp.lt.s32.totalorder %s2378_s30, 49  ;;  %s2867_s24 = smov (!%p1519_p0, %s2865_s24), 49 }
  0xf2   : > { %s2869_s30 = smov (!%p795_p1, %s2378_s30), 0  ;;  %s896_s13 = scalar_lea.vmem %s2671_s1, %s2867_s24 }
  0xf3   : > { %p226_p3 = scmp.gt.s32.totalorder %s2382_s4, 0  ;;  %v897_v33 = vld [vmem:[%s896_s13] sm:$0x1]  ;;  %s2871_s30 = smov (!%p1478_p2, %s2869_s30), 49 }
  0xf4   : > { %899 = vrot.lane.b32.xlu1 %v897_v33, %s1871_s19  ;;  %s799_s14 = scalar_lea.vmem %s2671_s1, %s2871_s30  ;;  %p1237_p4 = scmp.lt.s32.totalorder %s2382_s4, 49 }
  0xf5   : > { %v2391_v27 = vpop.permute.xlu1 %643  ;;  %s227_s15 = scalar_select %p226_p3, %s2382_s4, 0  ;;  %v800_v35 = vld [vmem:[%s799_s14] sm:$0x1] }
  0xf6   : > { %p420_p5 = scmp.gt.s32.totalorder %s2386_s6, 0  ;;  %p1319_p6 = scmp.lt.s32.totalorder %s2386_s6, 49  ;;  %802 = vrot.lane.b32.xlu0 %v800_v35, %s1871_s19 }
  0xf7   : > { %s2873_s15 = smov (!%p1237_p4, %s227_s15), 49  ;;  %p174_p7 = scmp.gt.s32.totalorder %s2394_s22, 0 }
  0xf8   : > { %v2400_v29 = vpop.permute.xlu0 %582  ;;  %s2875_s6 = smov (!%p420_p5, %s2386_s6), 0  ;;  %s230_s2 = scalar_lea.vmem %s2671_s1, %s2873_s15 }
  0xf9   : > { %v231_v37 = vld [vmem:[%s230_s2] sm:$0x1]  ;;  %s2877_s6 = smov (!%p1319_p6, %s2875_s6), 49  ;;  %p1217_p8 = scmp.lt.s32.totalorder %s2394_s22, 49 }
  0xfa   : > { %232 = vst.msk [vmem:[#allocation2 + $0x8] sm:$0x1] %vm180_vm0, %v231_v37  ;;  %s175_s19 = scalar_select %p174_p7, %s2394_s22, 0 }
  0xfb   : > { %v2407_v31 = vpop.permute.xlu1 %740  ;;  %245 = vst.msk [vmem:[#allocation2 + $0x8] sm:$0x1] %vm194_vm1, %v2252_v40  ;;  %s424_s4 = scalar_lea.vmem %s2671_s1, %s2877_s6  ;;  %s2451_s6 = sld [smem:[#allocation4 + %s321_s0]] }
  0xfc   : > { %v425_v41 = vld [vmem:[%s424_s4] sm:$0x1]  ;;  %258 = vst.msk [vmem:[#allocation2 + $0x8] sm:$0x1] %vm208_vm2, %v2248_v39  ;;  %s2879_s19 = smov (!%p1217_p8, %s175_s19), 49  ;;  %s612_s17 = sadd.s32 4, %s2019_s10 }
  0xfd   : > { %426 = vst.msk [vmem:[#allocation2 + $0xa] sm:$0x1] %vm180_vm0, %v425_v41  ;;  %s178_s13 = scalar_lea.vmem %s2671_s1, %s2879_s19  ;;  %s2457_s15 = sld [smem:[#allocation4 + %s709_s7]] }
  0xfe   : > { %439 = vst.msk [vmem:[#allocation2 + $0xa] sm:$0x1] %vm194_vm1, %v2259_v45  ;;  %v179_v39 = vld [vmem:[%s178_s13] sm:$0x1]  ;;  %s2461_s25 = sld [smem:[#allocation4 + %s612_s17]]  ;;  %s903_s20 = sadd.s32 4, %s2022_s5 }
  0xff   : > { %452 = vst.msk [vmem:[#allocation2 + $0xa] sm:$0x1] %vm208_vm2, %v2349_v14  ;;  %s2467_s0 = sld [smem:[#allocation4 + %s903_s20]]  ;;  %s806_s14 = sadd.s32 4, %s2028_s28 }
 0x100   : > { %181 = vst.msk [vmem:[#allocation2] sm:$0x1] %vm180_vm0, %v179_v39  ;;  %p517_p9 = scmp.gt.s32.totalorder %s2439_s12, 0  ;;  %p1360_p12 = scmp.lt.s32.totalorder %s2439_s12, 49 }
 0x101   : > { %195 = vst.msk [vmem:[#allocation2] sm:$0x1] %vm194_vm1, %v2269_v49  ;;  %s2474_s24 = sld [smem:[#allocation4 + %s806_s14]]  ;;  %p323_p11 = scmp.gt.s32.totalorder %s2451_s6, 0 }
 0x102   : > { %v2415_v34 = vpop.permute.xlu0 %679  ;;  %s2881_s12 = smov (!%p517_p9, %s2439_s12), 0  ;;  %p1278_p13 = scmp.lt.s32.totalorder %s2451_s6, 49 }
 0x103   : > { %s2883_s12 = smov (!%p1360_p12, %s2881_s12), 49  ;;  %s2885_s6 = smov (!%p323_p11, %s2451_s6), 0 }
 0x104   : > { %v2421_v36 = vpop.permute.xlu1 %837  ;;  %s521_s19 = scalar_lea.vmem %s2671_s1, %s2883_s12  ;;  %p711_p0 = scmp.gt.s32.totalorder %s2457_s15, 0 }
 0x105   : > { %v522_v45 = vld [vmem:[%s521_s19] sm:$0x1]  ;;  %s2887_s6 = smov (!%p1278_p13, %s2885_s6), 49  ;;  %p1442_p1 = scmp.lt.s32.totalorder %s2457_s15, 49 }
 0x106   : > { %523 = vst.msk [vmem:[#allocation2 + $0xb] sm:$0x1] %vm180_vm0, %v522_v45  ;;  %s712_s9 = scalar_select %p711_p0, %s2457_s15, 0 }
 0x107   : > { %536 = vst.msk [vmem:[#allocation2 + $0xb] sm:$0x1] %vm194_vm1, %v2277_v52  ;;  %s327_s7 = scalar_lea.vmem %s2671_s1, %s2887_s6  ;;  %p614_p2 = scmp.gt.s32.totalorder %s2461_s25, 0 }
 0x108   : > { %v2429_v38 = vpop.permute.xlu0 %776  ;;  %v328_v47 = vld [vmem:[%s327_s7] sm:$0x1]  ;;  %p1401_p3 = scmp.lt.s32.totalorder %s2461_s25, 49  ;;  %549 = vst.msk [vmem:[#allocation2 + $0xb] sm:$0x1] %vm208_vm2, %v2370_v19  ;;  %s2889_s9 = smov (!%p1442_p1, %s712_s9), 49 }
 0x109   : > { %329 = vst.msk [vmem:[#allocation2 + $0x9] sm:$0x1] %vm180_vm0, %v328_v47  ;;  %s2891_s25 = smov (!%p614_p2, %s2461_s25), 0  ;;  %s715_s17 = scalar_lea.vmem %s2671_s1, %s2889_s9 }
 0x10a   : > { %342 = vst.msk [vmem:[#allocation2 + $0x9] sm:$0x1] %vm194_vm1, %v2285_v55  ;;  %p905_p4 = scmp.gt.s32.totalorder %s2467_s0, 0  ;;  %v716_v48 = vld [vmem:[%s715_s17] sm:$0x1]  ;;  %s2893_s25 = smov (!%p1401_p3, %s2891_s25), 49 }
 0x10b   : > { %v2445_v42 = vpop.permute.xlu1 %934  ;;  %355 = vst.msk [vmem:[#allocation2 + $0x9] sm:$0x1] %vm208_vm2, %v2333_v6  ;;  %s618_s15 = scalar_lea.vmem %s2671_s1, %s2893_s25  ;;  %p1524_p5 = scmp.lt.s32.totalorder %s2467_s0, 49 }
 0x10c   : > { %717 = vst.msk [vmem:[#allocation2 + $0xd] sm:$0x1] %vm180_vm0, %v716_v48  ;;  %s906_s22 = scalar_select %p905_p4, %s2467_s0, 0  ;;  %v619_v50 = vld [vmem:[%s618_s15] sm:$0x1] }
 0x10d   : > { %v2464_v40 = vpop.permute.xlu0 %873  ;;  %730 = vst.msk [vmem:[#allocation2 + $0xd] sm:$0x1] %vm194_vm1, %v2298_v58  ;;  %p808_p6 = scmp.gt.s32.totalorder %s2474_s24, 0  ;;  %p1483_p7 = scmp.lt.s32.totalorder %s2474_s24, 49 }
 0x10e   : > { %743 = vst.msk [vmem:[#allocation2 + $0xd] sm:$0x1] %vm208_vm2, %v2407_v31  ;;  %s2895_s22 = smov (!%p1524_p5, %s906_s22), 49  ;;  %s274_s14 = sld [smem:[#allocation4 + %s1986_s8]] }
 0x10f   : > { %620 = vst.msk [vmem:[#allocation2 + $0xc] sm:$0x1] %vm180_vm0, %v619_v50  ;;  %s2897_s24 = smov (!%p808_p6, %s2474_s24), 0  ;;  %s909_s0 = scalar_lea.vmem %s2671_s1, %s2895_s22 }
 0x110   : > { %633 = vst.msk [vmem:[#allocation2 + $0xc] sm:$0x1] %vm194_vm1, %v2312_v62  ;;  %v910_v51 = vld [vmem:[%s909_s0] sm:$0x1]  ;;  %s2899_s24 = smov (!%p1483_p7, %s2897_s24), 49  ;;  %s371_s11 = sld [smem:[#allocation4 + %s1973_s18]] }
 0x111   : > { %646 = vst.msk [vmem:[#allocation2 + $0xc] sm:$0x1] %vm208_vm2, %v2391_v27  ;;  %s812_s9 = scalar_lea.vmem %s2671_s1, %s2899_s24  ;;  %s2540_s30 = sld [smem:[#allocation4 + %s1978_s27]] }
 0x112   : > { %911 = vst.msk [vmem:[#allocation2 + $0xf] sm:$0x1] %vm180_vm0, %v910_v51  ;;  %v813_v52 = vld [vmem:[%s812_s9] sm:$0x1]  ;;  %s2543_s8 = sld [smem:[#allocation4 + %s2019_s10]]  ;;  %s168_s27 = sand.u32 1, %s1855_s21  }
 0x113   : > { %924 = vst.msk [vmem:[#allocation2 + $0xf] sm:$0x1] %vm194_vm1, %v2320_v1  ;;  %s2549_s4 = sld [smem:[#allocation4 + %s2011_s16]]  ;;  %s1214_s16 = sshll.u32 %s168_s27, 3 }
 0x114   : > { %937 = vst.msk [vmem:[#allocation2 + $0xf] sm:$0x1] %vm208_vm2, %v2445_v42  ;;  %p275_p8 = scmp.gt.s32.totalorder %s274_s14, 0  ;;  %p1258_p9 = scmp.lt.s32.totalorder %s274_s14, 49 }
 0x115   : > { %v269_v43 = vpop.permute.xlu1 %268  ;;  %814 = vst.msk [vmem:[#allocation2 + $0xe] sm:$0x1] %vm180_vm0, %v813_v52  ;;  %s2556_s18 = sld [smem:[#allocation4 + %s2028_s28]]  ;;  %s1872_s13 = smov [#allocation8]  }
 0x116   : > { %271 = vst.msk [vmem:[#allocation2 + $0x8] sm:$0x1] %vm222_vm3, %v269_v43  ;;  %s2901_s14 = smov (!%p275_p8, %s274_s14), 0  ;;  %p372_p12 = scmp.gt.s32.totalorder %s371_s11, 0 }
 0x117   : > { %827 = vst.msk [vmem:[#allocation2 + $0xe] sm:$0x1] %vm194_vm1, %v2325_v3  ;;  %p1299_p11 = scmp.lt.s32.totalorder %s371_s11, 49  ;;  %s2903_s14 = smov (!%p1258_p9, %s2901_s14), 49 }
 0x118   : > { %v206_v44 = vpop.permute.xlu0 %205  ;;  %840 = vst.msk [vmem:[#allocation2 + $0xe] sm:$0x1] %vm208_vm2, %v2421_v36  ;;  %s2905_s11 = smov (!%p372_p12, %s371_s11), 0  ;;  %s279_s10 = scalar_lea.vmem %s2671_s1, %s2903_s14 }
 0x119   : > { %209 = vst.msk [vmem:[#allocation2] sm:$0x1] %vm208_vm2, %v206_v44  ;;  %p469_p13 = scmp.gt.s32.totalorder %s2540_s30, 0  ;;  %v280_v56 = vld [vmem:[%s279_s10] sm:$0x1]  ;;  %s2907_s11 = smov (!%p1299_p11, %s2905_s11), 49 }
 0x11a   : > { %281 = vst.msk [vmem:[#allocation2 + $0x1] sm:$0x1] %vm180_vm0, %v280_v56  ;;  %s376_s12 = scalar_lea.vmem %s2671_s1, %s2907_s11  ;;  %p1340_p0 = scmp.lt.s32.totalorder %s2540_s30, 49 }
 0x11b   : > { %v366_v46 = vpop.permute.xlu1 %365  ;;  %s470_s28 = scalar_select %p469_p13, %s2540_s30, 0  ;;  %294 = vst.msk [vmem:[#allocation2 + $0x1] sm:$0x1] %vm194_vm1, %v2342_v10  ;;  %v377_v58 = vld [vmem:[%s376_s12] sm:$0x1] }
 0x11c   : > { %368 = vst.msk [vmem:[#allocation2 + $0x9] sm:$0x1] %vm222_vm3, %v366_v46  ;;  %p566_p1 = scmp.gt.s32.totalorder %s2543_s8, 0  ;;  %p1381_p2 = scmp.lt.s32.totalorder %s2543_s8, 49 }
 0x11d   : > { %378 = vst.msk [vmem:[#allocation2 + $0x2] sm:$0x1] %vm180_vm0, %v377_v58  ;;  %s2909_s28 = smov (!%p1340_p0, %s470_s28), 49  ;;  %p663_p3 = scmp.gt.s32.totalorder %s2549_s4, 0 }
 0x11e   : > { %v305_v53 = vpop.permute.xlu0 %304  ;;  %391 = vst.msk [vmem:[#allocation2 + $0x2] sm:$0x1] %vm194_vm1, %v2359_v17  ;;  %s2911_s8 = smov (!%p566_p1, %s2543_s8), 0  ;;  %s473_s22 = scalar_lea.vmem %s2671_s1, %s2909_s28 }
 0x11f   : > { %307 = vst.msk [vmem:[#allocation2 + $0x1] sm:$0x1] %vm208_vm2, %v305_v53  ;;  %v474_v60 = vld [vmem:[%s473_s22] sm:$0x1]  ;;  %s2913_s8 = smov (!%p1381_p2, %s2911_s8), 49  ;;  %p1422_p4 = scmp.lt.s32.totalorder %s2549_s4, 49 }
 0x120   : > { %v463_v49 = vpop.permute.xlu1 %462  ;;  %475 = vst.msk [vmem:[#allocation2 + $0x3] sm:$0x1] %vm180_vm0, %v474_v60  ;;  %s664_s26 = scalar_select %p663_p3, %s2549_s4, 0 }
 0x121   : > { %465 = vst.msk [vmem:[#allocation2 + $0xa] sm:$0x1] %vm222_vm3, %v463_v49  ;;  %s570_s25 = scalar_lea.vmem %s2671_s1, %s2913_s8  ;;  %p760_p5 = scmp.gt.s32.totalorder %s2556_s18, 0 }
 0x122   : > { %488 = vst.msk [vmem:[#allocation2 + $0x3] sm:$0x1] %vm194_vm1, %v2380_v23  ;;  %v571_v62 = vld [vmem:[%s570_s25] sm:$0x1]  ;;  %p1463_p6 = scmp.lt.s32.totalorder %s2556_s18, 49  ;;  %s2915_s26 = smov (!%p1422_p4, %s664_s26), 49 }
 0x123   : > { %v402_v55 = vpop.permute.xlu0 %401  ;;  %572 = vst.msk [vmem:[#allocation2 + $0x4] sm:$0x1] %vm180_vm0, %v571_v62  ;;  %s2917_s18 = smov (!%p760_p5, %s2556_s18), 0  ;;  %s667_s14 = scalar_lea.vmem %s2671_s1, %s2915_s26 }
 0x124   : > { %404 = vst.msk [vmem:[#allocation2 + $0x2] sm:$0x1] %vm208_vm2, %v402_v55  ;;  %s856_s11 = sld [smem:[#allocation4 + %s2022_s5]]  ;;  %v668_v0 = vld [vmem:[%s667_s14] sm:$0x1]  ;;  %s2919_s18 = smov (!%p1463_p6, %s2917_s18), 49 }
 0x125   : > { %585 = vst.msk [vmem:[#allocation2 + $0x4] sm:$0x1] %vm194_vm1, %v2400_v29  ;;  %s764_s9 = scalar_lea.vmem %s2671_s1, %s2919_s18  ;;  %s1546_s10 = sshll.u32 %s1922_s23, 7 }
 0x126   : > { %669 = vst.msk [vmem:[#allocation2 + $0x5] sm:$0x1] %vm180_vm0, %v668_v0  ;;  %v765_v1 = vld [vmem:[%s764_s9] sm:$0x1]  ;;  %s170_s28 = scalar_lea.vmem [#allocation8], %s1214_s16  ;;  %s2700_s6 = sld [smem:[#allocation19_spill]] }
 0x127   : > { %682 = vst.msk [vmem:[#allocation2 + $0x5] sm:$0x1] %vm194_vm1, %v2415_v34  ;;  %s1086_s24 = sshll.u32 %s170_s28, 4  ;;  %s1073_s22 = scalar_lea.sflag [#allocation7], %s168_s27  ;;  %s1087_s24 = int_to_ptr.vmem [resolvable:$true] %s1086_s24 }
 0x128   : > { %766 = vst.msk [vmem:[#allocation2 + $0x6] sm:$0x1] %vm180_vm0, %v765_v1  ;;  %s1797_s26 = scalar_lea.vmem %s1087_s24, 128  ;;  %s1801_s15 = sshll.u32 %s1872_s13, 4  ;;  %s1802_s15 = int_to_ptr.vmem [resolvable:$false] %s1801_s15 }
 0x129   : > { %779 = vst.msk [vmem:[#allocation2 + $0x6] sm:$0x1] %vm194_vm1, %v2429_v38  ;;  %p1798_p9 = scmp.ne.s32.totalorder %s1087_s24, %s1797_s26  ;;  %s1803_s23 = scalar_lea.vmem %s1802_s15, 256 }
 0x12a   : > { %p857_p7 = scmp.gt.s32.totalorder %s856_s11, 0  ;;  %p1504_p8 = scmp.lt.s32.totalorder %s856_s11, 49 }
 0x12b   : > { %v560_v54 = vpop.permute.xlu1 %559  ;;  %p1799_p12 = pnand %p1798_p9, %p1939_p10  ;;  %p1804_p13 = scmp.lt.s32.totalorder %s1087_s24, %s1802_s15 }
 0x12c   : > { %562 = vst.msk [vmem:[#allocation2 + $0xb] sm:$0x1] %vm222_vm3, %v560_v54  ;;  %s2921_s11 = smov (!%p857_p7, %s856_s11), 0  ;;  %s1084_s17 = scalar_lea.hbm %s2700_s6, %s1546_s10 }
 0x12d   : > { %v499_v59 = vpop.permute.xlu0 %498  ;;  %s2923_s11 = smov (!%p1504_p8, %s2921_s11), 49  ;;  %p1800_p11 = pneg %p1799_p12 }
 0x12e   : > { %501 = vst.msk [vmem:[#allocation2 + $0x3] sm:$0x1] %vm208_vm2, %v499_v59  ;;  %s861_s8 = scalar_lea.vmem %s2671_s1, %s2923_s11  ;;  %p1805_p0 = scmp.lt.s32.totalorder %s1803_s23, %s1797_s26 }
 0x12f   : > { %v862_v5 = vld [vmem:[%s861_s8] sm:$0x1] }
 0x130   : > { %863 = vst.msk [vmem:[#allocation2 + $0x7] sm:$0x1] %vm180_vm0, %v862_v5  ;;  %p1806_p1 = por %p1805_p0, %p1804_p13 }
 0x131   : > { %v657_v57 = vpop.permute.xlu1 %656  ;;  %876 = vst.msk [vmem:[#allocation2 + $0x7] sm:$0x1] %vm194_vm1, %v2464_v40 }
 0x132   : > { %659 = vst.msk [vmem:[#allocation2 + $0xc] sm:$0x1] %vm222_vm3, %v657_v57  ;;  %p1807_p2 = pnand %p1806_p1, %p1800_p11 }
 0x134   : > { %v596_v63 = vpop.permute.xlu0 %595 }
 0x135   : > { %598 = vst.msk [vmem:[#allocation2 + $0x4] sm:$0x1] %vm208_vm2, %v596_v63 }
 0x136   : > { %v754_v61 = vpop.permute.xlu1 %753 }
 0x137   : > { %756 = vst.msk [vmem:[#allocation2 + $0xd] sm:$0x1] %vm222_vm3, %v754_v61 }
 0x13d   : > { %v693_v2 = vpop.permute.xlu0 %692 }
 0x13e   : > { %695 = vst.msk [vmem:[#allocation2 + $0x5] sm:$0x1] %vm208_vm2, %v693_v2 }
 0x13f   : > { %v851_v3 = vpop.permute.xlu1 %850 }
 0x140   : > { %853 = vst.msk [vmem:[#allocation2 + $0xe] sm:$0x1] %vm222_vm3, %v851_v3 }
 0x143   : > { %v790_v4 = vpop.permute.xlu0 %789 }
 0x144   : > { %792 = vst.msk [vmem:[#allocation2 + $0x6] sm:$0x1] %vm208_vm2, %v790_v4 }
 0x146   : > { %v948_v6 = vpop.permute.xlu1 %947 }
 0x147   : > { %950 = vst.msk [vmem:[#allocation2 + $0xf] sm:$0x1] %vm222_vm3, %v948_v6 }
 0x149   : > { %v887_v7 = vpop.permute.xlu0 %886 }
 0x14a   : > { %889 = vst.msk [vmem:[#allocation2 + $0x7] sm:$0x1] %vm208_vm2, %v887_v7 }
 0x14e   : > { %v952_v8 = vld [vmem:[#allocation2 + $0x8] sm:$0xff] }
 0x14f   : > { %1056 = vmatprep.mubr.f32.mxu0 %v952_v8 }
 0x150   : > { %v318_v9 = vpop.permute.xlu1 %317 }
 0x151   : > { %320 = vst.msk [vmem:[#allocation2 + $0x1] sm:$0x1] %vm222_vm3, %v318_v9 }
 0x152   : > { %v220_v10 = vpop.permute.xlu0 %219 }
 0x153   : > { %223 = vst.msk [vmem:[#allocation2] sm:$0x1] %vm222_vm3, %v220_v10 }
 0x156   : > { %v512_v11 = vpop.permute.xlu1 %511 }
 0x157   : > { %514 = vst.msk [vmem:[#allocation2 + $0x3] sm:$0x1] %vm222_vm3, %v512_v11 }
 0x159   : > { %v415_v12 = vpop.permute.xlu0 %414 }
 0x15a   : > { %417 = vst.msk [vmem:[#allocation2 + $0x2] sm:$0x1] %vm222_vm3, %v415_v12 }
 0x15b   : > { %v706_v13 = vpop.permute.xlu1 %705 }
 0x15c   : > { %708 = vst.msk [vmem:[#allocation2 + $0x5] sm:$0x1] %vm222_vm3, %v706_v13 }
 0x15e   : > { %v609_v14 = vpop.permute.xlu0 %608 }
 0x15f   : > { %611 = vst.msk [vmem:[#allocation2 + $0x4] sm:$0x1] %vm222_vm3, %v609_v14 }
 0x166   : > { %v900_v15 = vpop.permute.xlu1 %899 }
 0x167   : > { %902 = vst.msk [vmem:[#allocation2 + $0x7] sm:$0x1] %vm222_vm3, %v900_v15 }
 0x168   : > { %v803_v16 = vpop.permute.xlu0 %802 }
 0x169   : > { %805 = vst.msk [vmem:[#allocation2 + $0x6] sm:$0x1] %vm222_vm3, %v803_v16 }
 0x170   : > { %v951_v17 = vld [vmem:[#allocation2] sm:$0xff] }
 0x171   : > { %1057 = vmatmul.mubr.f32.vlgmr.msra.gmra.mxu0 %v951_v17 }
 0x231   : > { %v1058_v19 = vpop.f32.mrf.mxu0 }
 0x232   : > { %v1059_v20 = vadd.f32 %v1544_v18, %v1058_v19 }
 0x233   : > { %v1060_v21 = vpop.f32.mrf.mxu0 }
 0x234   : > { %1062 = vmax.xlane.f32.xlu0 %v1059_v20 }
 0x2bd   : > { %v1063_v22 = vpop.xlane.xlu0 %1062 }
 0x2be   : > { %v1064_v23 = vsub.f32 %v1059_v20, %v1063_v22 }
 0x2c0   : > { %v1065_v24 = vmul.f32 1.442695, %v1064_v23 }
 0x2c2   : > { %1755 = vpow2.f32 %v1065_v24 }
 0x2cf   : > { %v1756_v25 = vpop.eup %1755 }
 0x2d0   : > { %1067 = vadd.xlane.f32.xlu1 %v1756_v25 }
 0x359   : > { %v1068_v26 = vpop.xlane.xlu1 %1067 }
 0x35a   : > { %1757 = vrcp.f32 %v1068_v26 }
 0x367   : > { %v1758_v27 = vpop.eup %1757 }
 0x368   : > { %v1070_v28 = vmul.f32 %v1758_v27, %v1756_v25 }
 0x36a   : > { %1071 = vst [vmem:[%s170_s28] sm:$0xff] %v1070_v28 }
 0x36b   : > { %1810 = shalt.err (!%p1807_p2)
}
 0x36c   : > { %s1811_s25 = scalar_lea.hbm %s1084_s17, 128  ;;  %s1815_s14 = scalar_lea.hbm %s2700_s6, 256 }
 0x36d   : > { %p1812_p3 = scmp.ne.s32.totalorder %s1084_s17, %s1811_s25  ;;  %p1816_p6 = scmp.lt.s32.totalorder %s1084_s17, %s2700_s6 }
 0x36e   : > { %p1817_p7 = scmp.lt.s32.totalorder %s1815_s14, %s1811_s25 }
 0x36f   : > { %p1813_p4 = pnand %p1812_p3, %p1939_p10 }
 0x370   : > { %p1818_p8 = por %p1817_p7, %p1816_p6 }
 0x371   : > { %p1814_p5 = pneg %p1813_p4 }
 0x373   : > { %p1819_p9 = pnand %p1818_p8, %p1814_p5 }
 0x375   : > { %1822 = shalt.err (!%p1819_p9)
}
 0x376   : > { %1703 = dma.vmem_to_hbm [thread:$0]  (%p1939_p10), %s1087_s24, 128, %s1084_s17, %s1073_s22  }
 0x377 PF: > { %s2701_s19 = sld [smem:[#allocation14_spill]] }
 0x378   : > { %s2702_s9 = sld [smem:[#allocation12_spill]] }
 0x379   : > { %s2703_s5 = sld [smem:[#allocation17_spill]] }
 0x37d   : > { %p1715_p12 = scmp.ge.s32.totalorder %s2701_s19, 2 }
 0x37e   : > { %s1098_s30 = sand.u32 1, %s2702_s9  }
 0x37f   : > { %p2704_p11 = scmp.ne.s32.totalorder %s2703_s5, 0  ;;  %s1099_s8 = scalar_lea.sflag [#allocation7], %s1098_s30 }
 0x381   : > { %p1710_p13 = pnand %p1715_p12, %p2704_p11 }
 0x383   : > { %p1711_p0 = pneg %p1710_p13 }
 0x385   : > { %1846 = dma.done.wait (%p1711_p0), %s1099_s8, 128  }
 0x386   : > { %1848 = vsyncadd (%p1711_p0), %s1099_s8, 4294967168  ;;  %s2705_s22 = sld [smem:[#allocation15_spill]]  ;;  %s2708_s20 = smov %s1855_s21 }
 0x387   : > { %s2706_s4 = sld [smem:[#allocation13_spill]] }
 0x388   : > { %s2707_s0 = sld [smem:[#allocation16_spill]] }
 0x38c   : > { %p21_p1 = scmp.ge.s32.totalorder %s2705_s22, 4  }
 0x38d   : > { %s2709_s21 = smov %s2706_s4 }
 0x38e   :  { %23 = sbr.rel (!%p21_p1) target bundleno = 20 (0x14), region = 133 }
 0x393   :  { %1104 = vsyncpa [#allocation6], 1 }
 0x394   :  { %1106 = vsyncpa [#allocation6 + $0x1], 1 }
 0x395   :  { %1107 = vsyncpa [#allocation7], 1 }
 0x396   :  { %1109 = vsyncpa [#allocation7 + $0x1], 1 }

</bundles_post_ra>
